<compile_context>
chip_gen: v5e
topology: v5e:2x2
jax: 0.10.0
libtpu: 0.0.40
codegen_flags: <defaults>
</compile_context>

<pallas_src>
import warnings
from typing import Dict, Optional

import jax
import jax.numpy as jnp
from jax.experimental import pallas as pl
from jax.experimental.pallas import tpu as pltpu


_DTYPE_MAP = {
    None: None,
    "float": jnp.float32,
    "bfloat16": jnp.bfloat16,
    "half": jnp.float16,
    "float16": jnp.float16,
    "int": jnp.int32,
    "long": jnp.int64,  # true 64-bit only with jax_enable_x64
}

_LANE = 128
_SUBLANE = 8

# Below this many bytes (max of input/output footprint) the pallas_call launch
# + reshape overhead cannot beat a plain fused XLA convert.
_MIN_PALLAS_BYTES = 1 << 20  # 1 MiB

# Per-tile byte budget measured in the wider of the two dtypes.  With default
# double buffering the total VMEM footprint is <= 2*(in_tile + out_tile)
# <= ~8 MiB: safe on v5e (16 MiB scoped default), v6e (32 MiB) and v7x
# (64 MiB physical per TensorCore).
_TARGET_TILE_BYTES = 2 << 20  # 2 MiB

# Dtypes without a clean native TPU vector path inside Mosaic; route the cast
# through plain XLA instead of the Pallas kernel.
# TODO(synk): 'long'/int64 has no native 64-bit TPU vector path; values are
# int32 unless jax_enable_x64 is set (matches previous behaviour, now warned).
_XLA_ONLY_DTYPES = (jnp.float16, jnp.int64)


def _cast_kernel(x_ref, o_ref):
    # Elementwise dtype cast on the VPU; kernel is HBM-bandwidth bound.
    o_ref[...] = x_ref[...].astype(o_ref.dtype)


def _choose_cols(n: int) -> int:
    """Widest lane-dense column count (multiple of 128) dividing n, or 0."""
    for cols in (4096, 2048, 1024, 512, 256, 128):
        if n % cols == 0:
            return cols
    return 0


def _pallas_cast(x: jax.Array, out_dtype) -> jax.Array:
    """Cast `x` to `out_dtype`, using a Pallas TPU copy kernel when profitable."""
    if out_dtype is None or jnp.dtype(out_dtype) == x.dtype:
        # Identity: no compute, no HBM traffic.
        return x

    out_dtype = jnp.dtype(out_dtype)
    in_item = jnp.dtype(x.dtype).itemsize
    out_item = out_dtype.itemsize
    max_item = max(in_item, out_item)
    n = x.size
    cols = _choose_cols(n)

    if (
        n == 0
        or n * max_item < _MIN_PALLAS_BYTES
        or cols == 0
        or x.dtype in _XLA_ONLY_DTYPES
        or out_dtype in _XLA_ONLY_DTYPES
    ):
        # Small / lane-unaligned / no-native-dtype path: let XLA fuse it.
        return x.astype(out_dtype)

    rows = n // cols
    # Contiguous, layout-preserving reshape: no extra HBM pass.
    slab = x.reshape(rows, cols)

    # Tile the row dimension so each input/output tile is ~2 MiB (wider dtype).
    block_rows = max(1, _TARGET_TILE_BYTES // (cols * max_item))
    if block_rows >= rows:
        block_rows = rows  # single row-block equals the full dim (always legal)
    else:
        # Multiple blocks: second-to-last block dim must be a multiple of 8.
        block_rows = max(_SUBLANE, (block_rows // _SUBLANE) * _SUBLANE)
    grid = (pl.cdiv(rows, block_rows),)  # ragged last tile handled by Pallas

    out = pl.pallas_call(
        _cast_kernel,
        out_shape=jax.ShapeDtypeStruct((rows, cols), out_dtype),
        grid=grid,
        in_specs=[pl.BlockSpec((block_rows, cols), lambda i: (i, 0))],
        out_specs=pl.BlockSpec((block_rows, cols), lambda i: (i, 0)),
        compiler_params=pltpu.CompilerParams(
            # Single data-parallel grid axis -> sharded across both
            # TensorCores on v7x / megacore parts.
            dimension_semantics=("parallel",),
        ),
    )(slab)

    return out.reshape(x.shape)


class ReMapkey:
    """JAX/Pallas equivalent of NeMo's ReMapkey conditioner.

    forward(element) -> {key: element.astype(self.dtype)}
    where key = output_key if set, else input_key.
    """

    def __init__(self, output_key: Optional[str] = None, dtype: Optional[str] = None):
        self.output_key = output_key
        self.input_key: Optional[str] = None  # mirrors AbstractEmbModel.input_key
        self.dtype = _DTYPE_MAP[dtype]
        if dtype == "long" and not jax.config.jax_enable_x64:
            warnings.warn(
                "ReMapkey dtype='long' without jax_enable_x64: values will be int32."
            )

    def forward(self, element) -> Dict[str, jax.Array]:
        key = self.output_key if self.output_key else self.input_key
        if isinstance(element, jax.Array):
            element = _pallas_cast(element, self.dtype)
        return {key: element}

    __call__ = forward

    def details(self) -> str:
        key = self.output_key if self.output_key else self.input_key
        return f"Output key: {key} \n\tDtype: {self.dtype}"


if __name__ == "__main__":
    key = jax.random.PRNGKey(0)
    k_small, k_big = jax.random.split(key)

    module = ReMapkey(output_key="latent_condition", dtype="bfloat16")
    module.input_key = "latent"

    # 1) Spec-sized small tensor: takes the fused-XLA fast path (by design).
    x_small = jax.random.normal(k_small, (2, 4, 16, 16), dtype=jnp.float32)
    out_small = jax.block_until_ready(module(x_small)["latent_condition"])
    assert out_small.shape == x_small.shape and out_small.dtype == jnp.bfloat16
    assert jnp.array_equal(out_small, x_small.astype(jnp.bfloat16))

    # 2) Larger lane-aligned tensor: exercises the Pallas cast kernel
    #    (rows=256, cols=4096, block_rows=128 -> grid of 2 tiles).
    x_big = jax.random.normal(k_big, (4, 16, 128, 128), dtype=jnp.float32)
    out_big = jax.block_until_ready(module(x_big)["latent_condition"])
    assert out_big.shape == x_big.shape and out_big.dtype == jnp.bfloat16
    assert jnp.array_equal(out_big, x_big.astype(jnp.bfloat16))

    # 3) Identity path (dtype=None): returns the input unchanged, zero traffic.
    ident = ReMapkey(output_key=None, dtype=None)
    ident.input_key = "latent"
    out_ident = jax.block_until_ready(ident(x_small)["latent"])
    assert out_ident.dtype == x_small.dtype and jnp.array_equal(out_ident, x_small)

    print("KERNEL_OK")
</pallas_src>

<mosaic_0001>
module attributes {stable_mosaic.version = 11 : i64} {
  func.func @_cast_kernel(%arg0: i32, %arg1: memref<128x4096xf32, #tpu.memory_space<vmem>>, %arg2: memref<128x4096xbf16, #tpu.memory_space<vmem>>) attributes {dimension_semantics = [#tpu.dimension_semantics<parallel>], iteration_bounds = array<i64: 2>, scalar_prefetch = 0 : i64, scratch_operands = 0 : i64, tpu.core_type = #tpu.core_type<tc>, window_params = [{transform_indices = @transform_0, window_bounds = array<i64: 128, 4096>}, {transform_indices = @transform_1, window_bounds = array<i64: 128, 4096>}]} {
    %c0 = arith.constant 0 : index
    %c0_0 = arith.constant 0 : index
    %0 = vector.load %arg1[%c0, %c0_0] : memref<128x4096xf32, #tpu.memory_space<vmem>>, vector<128x4096xf32>
    %1 = arith.truncf %0 : vector<128x4096xf32> to vector<128x4096xbf16>
    %c0_1 = arith.constant 0 : index
    %c0_2 = arith.constant 0 : index
    %2 = vector.load %arg2[%c0_1, %c0_2] : memref<128x4096xbf16, #tpu.memory_space<vmem>>, vector<128x4096xbf16>
    tpu.vector_store %arg2[%c0_1, %c0_2], %1 {strides = array<i32>} : memref<128x4096xbf16, #tpu.memory_space<vmem>>, vector<128x4096xbf16>,
    return
  }
  func.func @transform_0(%arg0: i32) -> (i32, i32) {
    %c0_i32 = arith.constant 0 : i32
    %c0_i32_0 = arith.constant 0 : i32
    return %arg0, %c0_i32 : i32, i32
  }
  func.func @transform_1(%arg0: i32) -> (i32, i32) {
    %c0_i32 = arith.constant 0 : i32
    %c0_i32_0 = arith.constant 0 : i32
    return %arg0, %c0_i32 : i32, i32
  }
}

</mosaic_0001>

<bundles_post_ra>
// kernel: tpu_custom_call.1
= control target key start
LH: loop header
LB: loop body
LE: loop exit
PB: predicated region body
PF: predicated region fallthrough
CT: control target
= control target key end

     0   :  { %6 = vsyncpa [#allocation3], 0  ;;  %s2337_s0 = inlined_call_operand.hbm [shape: f32[256,4096], index: 0, kind: input, shape index: {}]   ;;  %s2338_s1 = inlined_call_operand.hbm [shape: bf16[256,4096], index: 1, kind: output, shape index: {}]  }
   0x1   :  { %8 = vsyncpa [#allocation3 + $0x1], 0 }
   0x2   :  { %9 = vsyncpa [#allocation4], 0 }
   0x3   :  { %11 = vsyncpa [#allocation4 + $0x1], 0  ;;  %s1436_s6 = smov 0   ;;  %s1438_s7 = smov 0  }
   0x4   :  { %s1440_s8 = smov 0   ;;  %s1442_s9 = smov 0  }
   0x5 LB: > { %s1457_s10 = sadd.s32 4294967295, %s1420_s9   ;;  %s1254_s11 = sadd.s32 4294967294, %s1420_s9   ;;  %s1420_s9 = sphi %s1442_s9, %s2348_s9   ;;  %s1416_s8 = sphi %s1440_s8, %s2347_s8   ;;  %s1412_s7 = sphi %s1438_s7, %s2346_s7   ;;  %s1408_s6 = sphi %s1436_s6, %s2345_s6  }
   0x6   : > { %s1461_s12 = sadd.s32 1, %s1420_s9   ;;  %s24_s13 = sadd.s32 1, %s1416_s8 }
   0x7   : > { %s21_s14 = ssub.s32 %s1420_s9, %s1461_s12  ;;  %p31_p0 = scmp.ne.s32.totalorder %s1416_s8, %s1412_s7 }
   0x8   : > { %p22_p1 = scmp.eq.s32.totalorder %s21_s14, 0  ;;  %p32_p2 = scmp.eq.s32.totalorder %s1420_s9, 0 }
   0x9   : > { %p37_p3 = scmp.ne.s32.totalorder %s1412_s7, %s1408_s6  ;;  %p38_p4 = scmp.eq.s32.totalorder %s1457_s10, 0 }
   0xa   : > { %s1473_s15 = scalar_select %p22_p1, %s1416_s8, %s24_s13  }
   0xb   : > { %p1475_p5 = por %p32_p2, %p31_p0  ;;  %p1479_p6 = por %p38_p4, %p37_p3 }
   0xc   : > { %p61_p7 = scmp.eq.s32.totalorder %s1457_s10, 1  ;;  %p67_p8 = scmp.eq.s32.totalorder %s1254_s11, 1 }
   0xd   : > { %p1286_p10 = scmp.lt.s32.totalorder %s1420_s9, 2  ;;  %s87_s20 = sand.u32 1, %s1416_s8  }
   0xe   : > { %p1486_p11 = por %p61_p7, %p31_p0  ;;  %p1490_p12 = por %p67_p8, %p37_p3 }
   0xf   : > { %s1271_s21 = sshll.u32 %s1420_s9, 12  ;;  %s1257_s22 = sshll.u32 %s87_s20, 12 }
  0x10   : > { %s97_s25 = scalar_lea.hbm %s2337_s0, %s1271_s21  ;;  %s91_s27 = scalar_lea.vmem [#allocation2], %s1257_s22 }
  0x11   : > { %s98_s26 = sshll.u32 %s97_s25, 4  ;;  %s100_s28 = sshll.u32 %s91_s27, 4  ;;  %s99_s26 = int_to_ptr.hbm [resolvable:$true] %s98_s26  ;;  %s101_s28 = int_to_ptr.vmem [resolvable:$true] %s100_s28 }
  0x12   : > { %p1501_p13 = pnand %p1286_p10, %p1475_p5  ;;  %p1261_p0 = scmp.ge.s32.totalorder %s1420_s9, 1 }
  0x13   : > { %p108_p1 = scmp.lt.s32.totalorder %s1420_s9, 3  ;;  %s88_s30 = scalar_lea.sflag [#allocation3], %s87_s20 }
  0x14   : > { %s1324_s2 = sshra.s32 %s99_s26, 4  ;;  %p1328_p3 = pneg %p1501_p13  ;;  %s1325_s2 = int_to_ptr.hbm [resolvable:$true] %s1324_s2 }
  0x15   : > { %s1326_s3 = scalar_lea.hbm %s1325_s2, 4096  ;;  %s1331_s11 = scalar_lea.hbm %s2337_s0, 8192 }
  0x16   : > { %p1327_p2 = scmp.ne.s32.totalorder %s1325_s2, %s1326_s3  ;;  %p1332_p5 = scmp.lt.s32.totalorder %s1325_s2, %s2337_s0 }
  0x17   : > { %p1333_p8 = scmp.lt.s32.totalorder %s1331_s11, %s1326_s3 }
  0x18   : > { %p1329_p4 = pnand %p1328_p3, %p1327_p2 }
  0x19   : > { %p1334_p10 = por %p1333_p8, %p1332_p5 }
  0x1a   : > { %p1330_p7 = pneg %p1329_p4 }
  0x1c   : > { %p1335_p9 = pnand %p1334_p10, %p1330_p7 }
  0x1e   : > { %1338 = shalt.err (!%p1335_p9)
}
  0x1f   : > { %s1422_s16 = smov 4096   ;;  %s1423_s20 = smov 256  }
  0x20   : > { %1281 = dma.hbm_to_vmem [thread:$0]  (!%p1501_p13), %s99_s26, 65536, %s101_s28, %s88_s30, %s1422_s16, %s1422_s16, %s1423_s20  }
  0x21   : > { %p109_p2 = pnand %p1261_p0, %p108_p1 }
  0x22   : > { %s1522_s21 = sand.u32 (!%p109_p2), 1, %s1412_s7  }
  0x23   : > { %112 = sbr.rel (%p109_p2) target bundleno = 303 (0x12f), region = 24  ;;  %s1262_s22 = sshll.u32 (!%p109_p2), %s1522_s21, 12 }
  0x24   : > { %s115_s23 = scalar_lea.sflag (!%p109_p2), [#allocation3], %s1522_s21  ;;  %s1526_s24 = scalar_lea.vmem (!%p109_p2), [#allocation2], %s1262_s22 }
  0x28   : > { %1399 = dma.done.wait (%p1479_p6), %s115_s23, 65536  }
  0x29   : > { %1401 = vsyncadd (%p1479_p6), %s115_s23, 4294901760  ;;  %s1263_s25 = sshll.u32 %s1522_s21, 11  ;;  %v140_v0 = vld [vmem:[%s1526_s24] sm:$0xff]  ;;  %v141_v1 = vld [vmem:[%s1526_s24 + $0x8] sm:$0xff]  ;;  %s1273_s26 = sshll.u32 %s1457_s10, 11 }
  0x2a   : > { %v142_v2 = vld [vmem:[%s1526_s24 + $0x10] sm:$0xff]  ;;  %v652_v3 = vpack.c.bf16 %v141_v1, %v140_v0  ;;  %v143_v4 = vld [vmem:[%s1526_s24 + $0x18] sm:$0xff]  ;;  %v144_v5 = vld [vmem:[%s1526_s24 + $0x20] sm:$0xff]  ;;  %s1542_s17 = scalar_lea.vmem [#allocation5], %s1263_s25  ;;  %s1177_s28 = scalar_lea.hbm %s2338_s1, %s1273_s26 }
  0x2b   : > { %v145_v6 = vld [vmem:[%s1526_s24 + $0x28] sm:$0xff]  ;;  %v653_v7 = vpack.c.bf16 %v143_v4, %v142_v2  ;;  %v146_v9 = vld [vmem:[%s1526_s24 + $0x30] sm:$0xff]  ;;  %v147_v10 = vld [vmem:[%s1526_s24 + $0x38] sm:$0xff]  ;;  %s1178_s29 = sshll.u32 %s1542_s17, 4  ;;  %s1180_s30 = sshll.u32 %s1177_s28, 4  ;;  %s1179_s29 = int_to_ptr.vmem [resolvable:$true] %s1178_s29  ;;  %s1181_s30 = int_to_ptr.hbm [resolvable:$true] %s1180_s30 }
  0x2c   : > { %v654_v8 = vpack.c.bf16 %v145_v6, %v144_v5  ;;  %v148_v11 = vld [vmem:[%s1526_s24 + $0x40] sm:$0xff]  ;;  %908 = vst [vmem:[%s1542_s17] sm:$0xff] %v652_v3  ;;  %v655_v12 = vpack.c.bf16 %v147_v10, %v146_v9  ;;  %v149_v13 = vld [vmem:[%s1526_s24 + $0x48] sm:$0xff]  ;;  %v150_v14 = vld [vmem:[%s1526_s24 + $0x50] sm:$0xff]  ;;  %s1165_s2 = scalar_lea.sflag [#allocation4], %s1522_s21  ;;  %s1368_s3 = sshra.s32 %s1181_s30, 4  ;;  %s1369_s3 = int_to_ptr.hbm [resolvable:$true] %s1368_s3 }
  0x2d   : > { %v151_v15 = vld [vmem:[%s1526_s24 + $0x58] sm:$0xff]  ;;  %909 = vst [vmem:[%s1542_s17 + $0x8] sm:$0xff] %v653_v7  ;;  %v656_v16 = vpack.c.bf16 %v149_v13, %v148_v11  ;;  %v152_v18 = vld [vmem:[%s1526_s24 + $0x60] sm:$0xff]  ;;  %v153_v19 = vld [vmem:[%s1526_s24 + $0x68] sm:$0xff]  ;;  %s1370_s4 = scalar_lea.hbm %s1369_s3, 2048  ;;  %s1374_s13 = scalar_lea.hbm %s2338_s1, 4096 }
  0x2e   : > { %v657_v17 = vpack.c.bf16 %v151_v15, %v150_v14  ;;  %v154_v20 = vld [vmem:[%s1526_s24 + $0x70] sm:$0xff]  ;;  %910 = vst [vmem:[%s1542_s17 + $0x10] sm:$0xff] %v654_v8  ;;  %v658_v21 = vpack.c.bf16 %v153_v19, %v152_v18  ;;  %v155_v22 = vld [vmem:[%s1526_s24 + $0x78] sm:$0xff]  ;;  %v156_v23 = vld [vmem:[%s1526_s24 + $0x80] sm:$0xff]  ;;  %p1371_p6 = scmp.ne.s32.totalorder %s1369_s3, %s1370_s4  ;;  %p1375_p0 = scmp.lt.s32.totalorder %s1369_s3, %s2338_s1 }
  0x2f   : > { %v157_v24 = vld [vmem:[%s1526_s24 + $0x88] sm:$0xff]  ;;  %911 = vst [vmem:[%s1542_s17 + $0x18] sm:$0xff] %v655_v12  ;;  %v659_v25 = vpack.c.bf16 %v155_v22, %v154_v20  ;;  %v158_v26 = vld [vmem:[%s1526_s24 + $0x90] sm:$0xff]  ;;  %v159_v27 = vld [vmem:[%s1526_s24 + $0x98] sm:$0xff]  ;;  %p1376_p1 = scmp.lt.s32.totalorder %s1374_s13, %s1370_s4 }
  0x30   : > { %v160_v28 = vld [vmem:[%s1526_s24 + $0xa0] sm:$0xff]  ;;  %912 = vst [vmem:[%s1542_s17 + $0x20] sm:$0xff] %v656_v16  ;;  %v660_v29 = vpack.c.bf16 %v157_v24, %v156_v23  ;;  %v161_v30 = vld [vmem:[%s1526_s24 + $0xa8] sm:$0xff]  ;;  %v162_v31 = vld [vmem:[%s1526_s24 + $0xb0] sm:$0xff]  ;;  %v661_v33 = vpack.c.bf16 %v159_v27, %v158_v26  ;;  %p1372_p9 = pnand %p1371_p6, %p1486_p11 }
  0x31   : > { %v163_v32 = vld [vmem:[%s1526_s24 + $0xb8] sm:$0xff]  ;;  %913 = vst [vmem:[%s1542_s17 + $0x28] sm:$0xff] %v657_v17  ;;  %v164_v34 = vld [vmem:[%s1526_s24 + $0xc0] sm:$0xff]  ;;  %v165_v35 = vld [vmem:[%s1526_s24 + $0xc8] sm:$0xff]  ;;  %v662_v36 = vpack.c.bf16 %v161_v30, %v160_v28  ;;  %p1377_p3 = por %p1376_p1, %p1375_p0 }
  0x32   : > { %914 = vst [vmem:[%s1542_s17 + $0x30] sm:$0xff] %v658_v21  ;;  %v166_v37 = vld [vmem:[%s1526_s24 + $0xd0] sm:$0xff]  ;;  %v167_v38 = vld [vmem:[%s1526_s24 + $0xd8] sm:$0xff]  ;;  %v663_v39 = vpack.c.bf16 %v163_v32, %v162_v31  ;;  %v168_v40 = vld [vmem:[%s1526_s24 + $0xe0] sm:$0xff]  ;;  %v664_v42 = vpack.c.bf16 %v165_v35, %v164_v34  ;;  %p1373_p13 = pneg %p1372_p9 }
  0x33   : > { %915 = vst [vmem:[%s1542_s17 + $0x38] sm:$0xff] %v659_v25  ;;  %v169_v41 = vld [vmem:[%s1526_s24 + $0xe8] sm:$0xff]  ;;  %v170_v43 = vld [vmem:[%s1526_s24 + $0xf0] sm:$0xff]  ;;  %v171_v44 = vld [vmem:[%s1526_s24 + $0xf8] sm:$0xff]  ;;  %v665_v45 = vpack.c.bf16 %v167_v38, %v166_v37 }
  0x34   : > { %916 = vst [vmem:[%s1542_s17 + $0x40] sm:$0xff] %v660_v29  ;;  %v172_v46 = vld [vmem:[%s1526_s24 + $0x100] sm:$0xff]  ;;  %v173_v47 = vld [vmem:[%s1526_s24 + $0x108] sm:$0xff]  ;;  %v666_v48 = vpack.c.bf16 %v169_v41, %v168_v40  ;;  %v174_v49 = vld [vmem:[%s1526_s24 + $0x110] sm:$0xff]  ;;  %v667_v51 = vpack.c.bf16 %v171_v44, %v170_v43  ;;  %p1378_p4 = pnand %p1377_p3, %p1373_p13 }
  0x35   : > { %917 = vst [vmem:[%s1542_s17 + $0x48] sm:$0xff] %v661_v33  ;;  %v175_v50 = vld [vmem:[%s1526_s24 + $0x118] sm:$0xff]  ;;  %v176_v52 = vld [vmem:[%s1526_s24 + $0x120] sm:$0xff]  ;;  %v177_v53 = vld [vmem:[%s1526_s24 + $0x128] sm:$0xff]  ;;  %v668_v54 = vpack.c.bf16 %v173_v47, %v172_v46 }
  0x36   : > { %918 = vst [vmem:[%s1542_s17 + $0x50] sm:$0xff] %v662_v36  ;;  %v178_v55 = vld [vmem:[%s1526_s24 + $0x130] sm:$0xff]  ;;  %v179_v56 = vld [vmem:[%s1526_s24 + $0x138] sm:$0xff]  ;;  %v669_v57 = vpack.c.bf16 %v175_v50, %v174_v49  ;;  %v180_v58 = vld [vmem:[%s1526_s24 + $0x140] sm:$0xff]  ;;  %v670_v60 = vpack.c.bf16 %v177_v53, %v176_v52 }
  0x37   : > { %919 = vst [vmem:[%s1542_s17 + $0x58] sm:$0xff] %v663_v39  ;;  %v181_v59 = vld [vmem:[%s1526_s24 + $0x148] sm:$0xff]  ;;  %v182_v61 = vld [vmem:[%s1526_s24 + $0x150] sm:$0xff]  ;;  %v183_v62 = vld [vmem:[%s1526_s24 + $0x158] sm:$0xff]  ;;  %v671_v63 = vpack.c.bf16 %v179_v56, %v178_v55 }
  0x38   : > { %920 = vst [vmem:[%s1542_s17 + $0x60] sm:$0xff] %v664_v42  ;;  %v184_v0 = vld [vmem:[%s1526_s24 + $0x160] sm:$0xff]  ;;  %v185_v1 = vld [vmem:[%s1526_s24 + $0x168] sm:$0xff]  ;;  %v672_v2 = vpack.c.bf16 %v181_v59, %v180_v58  ;;  %v186_v3 = vld [vmem:[%s1526_s24 + $0x170] sm:$0xff]  ;;  %v673_v5 = vpack.c.bf16 %v183_v62, %v182_v61 }
  0x39   : > { %921 = vst [vmem:[%s1542_s17 + $0x68] sm:$0xff] %v665_v45  ;;  %v187_v4 = vld [vmem:[%s1526_s24 + $0x178] sm:$0xff]  ;;  %v188_v6 = vld [vmem:[%s1526_s24 + $0x180] sm:$0xff]  ;;  %v189_v7 = vld [vmem:[%s1526_s24 + $0x188] sm:$0xff]  ;;  %v674_v8 = vpack.c.bf16 %v185_v1, %v184_v0 }
  0x3a   : > { %922 = vst [vmem:[%s1542_s17 + $0x70] sm:$0xff] %v666_v48  ;;  %v190_v9 = vld [vmem:[%s1526_s24 + $0x190] sm:$0xff]  ;;  %v191_v10 = vld [vmem:[%s1526_s24 + $0x198] sm:$0xff]  ;;  %v675_v11 = vpack.c.bf16 %v187_v4, %v186_v3  ;;  %v192_v12 = vld [vmem:[%s1526_s24 + $0x1a0] sm:$0xff]  ;;  %v676_v14 = vpack.c.bf16 %v189_v7, %v188_v6 }
  0x3b   : > { %923 = vst [vmem:[%s1542_s17 + $0x78] sm:$0xff] %v667_v51  ;;  %v193_v13 = vld [vmem:[%s1526_s24 + $0x1a8] sm:$0xff]  ;;  %v194_v15 = vld [vmem:[%s1526_s24 + $0x1b0] sm:$0xff]  ;;  %v195_v16 = vld [vmem:[%s1526_s24 + $0x1b8] sm:$0xff]  ;;  %v677_v17 = vpack.c.bf16 %v191_v10, %v190_v9 }
  0x3c   : > { %924 = vst [vmem:[%s1542_s17 + $0x80] sm:$0xff] %v668_v54  ;;  %v196_v18 = vld [vmem:[%s1526_s24 + $0x1c0] sm:$0xff]  ;;  %v197_v19 = vld [vmem:[%s1526_s24 + $0x1c8] sm:$0xff]  ;;  %v678_v20 = vpack.c.bf16 %v193_v13, %v192_v12  ;;  %v198_v21 = vld [vmem:[%s1526_s24 + $0x1d0] sm:$0xff]  ;;  %v679_v23 = vpack.c.bf16 %v195_v16, %v194_v15 }
  0x3d   : > { %925 = vst [vmem:[%s1542_s17 + $0x88] sm:$0xff] %v669_v57  ;;  %v199_v22 = vld [vmem:[%s1526_s24 + $0x1d8] sm:$0xff]  ;;  %v200_v24 = vld [vmem:[%s1526_s24 + $0x1e0] sm:$0xff]  ;;  %v201_v25 = vld [vmem:[%s1526_s24 + $0x1e8] sm:$0xff]  ;;  %v680_v26 = vpack.c.bf16 %v197_v19, %v196_v18 }
  0x3e   : > { %926 = vst [vmem:[%s1542_s17 + $0x90] sm:$0xff] %v670_v60  ;;  %v202_v27 = vld [vmem:[%s1526_s24 + $0x1f0] sm:$0xff]  ;;  %v203_v28 = vld [vmem:[%s1526_s24 + $0x1f8] sm:$0xff]  ;;  %v681_v29 = vpack.c.bf16 %v199_v22, %v198_v21  ;;  %v204_v30 = vld [vmem:[%s1526_s24 + $0x200] sm:$0xff]  ;;  %v682_v32 = vpack.c.bf16 %v201_v25, %v200_v24 }
  0x3f   : > { %927 = vst [vmem:[%s1542_s17 + $0x98] sm:$0xff] %v671_v63  ;;  %v205_v31 = vld [vmem:[%s1526_s24 + $0x208] sm:$0xff]  ;;  %v206_v33 = vld [vmem:[%s1526_s24 + $0x210] sm:$0xff]  ;;  %v207_v34 = vld [vmem:[%s1526_s24 + $0x218] sm:$0xff]  ;;  %v683_v35 = vpack.c.bf16 %v203_v28, %v202_v27 }
  0x40   : > { %928 = vst [vmem:[%s1542_s17 + $0xa0] sm:$0xff] %v672_v2  ;;  %v208_v36 = vld [vmem:[%s1526_s24 + $0x220] sm:$0xff]  ;;  %v209_v37 = vld [vmem:[%s1526_s24 + $0x228] sm:$0xff]  ;;  %v684_v38 = vpack.c.bf16 %v205_v31, %v204_v30  ;;  %v210_v39 = vld [vmem:[%s1526_s24 + $0x230] sm:$0xff]  ;;  %v685_v41 = vpack.c.bf16 %v207_v34, %v206_v33 }
  0x41   : > { %929 = vst [vmem:[%s1542_s17 + $0xa8] sm:$0xff] %v673_v5  ;;  %v211_v40 = vld [vmem:[%s1526_s24 + $0x238] sm:$0xff]  ;;  %v212_v42 = vld [vmem:[%s1526_s24 + $0x240] sm:$0xff]  ;;  %v213_v43 = vld [vmem:[%s1526_s24 + $0x248] sm:$0xff]  ;;  %v686_v44 = vpack.c.bf16 %v209_v37, %v208_v36 }
  0x42   : > { %930 = vst [vmem:[%s1542_s17 + $0xb0] sm:$0xff] %v674_v8  ;;  %v214_v45 = vld [vmem:[%s1526_s24 + $0x250] sm:$0xff]  ;;  %v215_v46 = vld [vmem:[%s1526_s24 + $0x258] sm:$0xff]  ;;  %v687_v47 = vpack.c.bf16 %v211_v40, %v210_v39  ;;  %v216_v48 = vld [vmem:[%s1526_s24 + $0x260] sm:$0xff]  ;;  %v688_v50 = vpack.c.bf16 %v213_v43, %v212_v42 }
  0x43   : > { %931 = vst [vmem:[%s1542_s17 + $0xb8] sm:$0xff] %v675_v11  ;;  %v217_v49 = vld [vmem:[%s1526_s24 + $0x268] sm:$0xff]  ;;  %v218_v51 = vld [vmem:[%s1526_s24 + $0x270] sm:$0xff]  ;;  %v219_v52 = vld [vmem:[%s1526_s24 + $0x278] sm:$0xff]  ;;  %v689_v53 = vpack.c.bf16 %v215_v46, %v214_v45 }
  0x44   : > { %932 = vst [vmem:[%s1542_s17 + $0xc0] sm:$0xff] %v676_v14  ;;  %v220_v54 = vld [vmem:[%s1526_s24 + $0x280] sm:$0xff]  ;;  %v221_v55 = vld [vmem:[%s1526_s24 + $0x288] sm:$0xff]  ;;  %v690_v56 = vpack.c.bf16 %v217_v49, %v216_v48  ;;  %v222_v57 = vld [vmem:[%s1526_s24 + $0x290] sm:$0xff]  ;;  %v691_v59 = vpack.c.bf16 %v219_v52, %v218_v51 }
  0x45   : > { %933 = vst [vmem:[%s1542_s17 + $0xc8] sm:$0xff] %v677_v17  ;;  %v223_v58 = vld [vmem:[%s1526_s24 + $0x298] sm:$0xff]  ;;  %v224_v60 = vld [vmem:[%s1526_s24 + $0x2a0] sm:$0xff]  ;;  %v225_v61 = vld [vmem:[%s1526_s24 + $0x2a8] sm:$0xff]  ;;  %v692_v62 = vpack.c.bf16 %v221_v55, %v220_v54 }
  0x46   : > { %934 = vst [vmem:[%s1542_s17 + $0xd0] sm:$0xff] %v678_v20  ;;  %v226_v63 = vld [vmem:[%s1526_s24 + $0x2b0] sm:$0xff]  ;;  %v227_v0 = vld [vmem:[%s1526_s24 + $0x2b8] sm:$0xff]  ;;  %v693_v1 = vpack.c.bf16 %v223_v58, %v222_v57  ;;  %v228_v2 = vld [vmem:[%s1526_s24 + $0x2c0] sm:$0xff]  ;;  %v694_v4 = vpack.c.bf16 %v225_v61, %v224_v60 }
  0x47   : > { %935 = vst [vmem:[%s1542_s17 + $0xd8] sm:$0xff] %v679_v23  ;;  %v229_v3 = vld [vmem:[%s1526_s24 + $0x2c8] sm:$0xff]  ;;  %v230_v5 = vld [vmem:[%s1526_s24 + $0x2d0] sm:$0xff]  ;;  %v231_v6 = vld [vmem:[%s1526_s24 + $0x2d8] sm:$0xff]  ;;  %v695_v7 = vpack.c.bf16 %v227_v0, %v226_v63 }
  0x48   : > { %936 = vst [vmem:[%s1542_s17 + $0xe0] sm:$0xff] %v680_v26  ;;  %v232_v8 = vld [vmem:[%s1526_s24 + $0x2e0] sm:$0xff]  ;;  %v233_v9 = vld [vmem:[%s1526_s24 + $0x2e8] sm:$0xff]  ;;  %v696_v10 = vpack.c.bf16 %v229_v3, %v228_v2  ;;  %v234_v11 = vld [vmem:[%s1526_s24 + $0x2f0] sm:$0xff]  ;;  %v697_v13 = vpack.c.bf16 %v231_v6, %v230_v5 }
  0x49   : > { %937 = vst [vmem:[%s1542_s17 + $0xe8] sm:$0xff] %v681_v29  ;;  %v235_v12 = vld [vmem:[%s1526_s24 + $0x2f8] sm:$0xff]  ;;  %v236_v14 = vld [vmem:[%s1526_s24 + $0x300] sm:$0xff]  ;;  %v237_v15 = vld [vmem:[%s1526_s24 + $0x308] sm:$0xff]  ;;  %v698_v16 = vpack.c.bf16 %v233_v9, %v232_v8 }
  0x4a   : > { %938 = vst [vmem:[%s1542_s17 + $0xf0] sm:$0xff] %v682_v32  ;;  %v238_v17 = vld [vmem:[%s1526_s24 + $0x310] sm:$0xff]  ;;  %v239_v18 = vld [vmem:[%s1526_s24 + $0x318] sm:$0xff]  ;;  %v699_v19 = vpack.c.bf16 %v235_v12, %v234_v11  ;;  %v240_v20 = vld [vmem:[%s1526_s24 + $0x320] sm:$0xff]  ;;  %v700_v22 = vpack.c.bf16 %v237_v15, %v236_v14 }
  0x4b   : > { %939 = vst [vmem:[%s1542_s17 + $0xf8] sm:$0xff] %v683_v35  ;;  %v241_v21 = vld [vmem:[%s1526_s24 + $0x328] sm:$0xff]  ;;  %v242_v23 = vld [vmem:[%s1526_s24 + $0x330] sm:$0xff]  ;;  %v243_v24 = vld [vmem:[%s1526_s24 + $0x338] sm:$0xff]  ;;  %v701_v25 = vpack.c.bf16 %v239_v18, %v238_v17 }
  0x4c   : > { %940 = vst [vmem:[%s1542_s17 + $0x100] sm:$0xff] %v684_v38  ;;  %v244_v26 = vld [vmem:[%s1526_s24 + $0x340] sm:$0xff]  ;;  %v245_v27 = vld [vmem:[%s1526_s24 + $0x348] sm:$0xff]  ;;  %v702_v28 = vpack.c.bf16 %v241_v21, %v240_v20  ;;  %v246_v29 = vld [vmem:[%s1526_s24 + $0x350] sm:$0xff]  ;;  %v703_v31 = vpack.c.bf16 %v243_v24, %v242_v23 }
  0x4d   : > { %941 = vst [vmem:[%s1542_s17 + $0x108] sm:$0xff] %v685_v41  ;;  %v247_v30 = vld [vmem:[%s1526_s24 + $0x358] sm:$0xff]  ;;  %v248_v32 = vld [vmem:[%s1526_s24 + $0x360] sm:$0xff]  ;;  %v249_v33 = vld [vmem:[%s1526_s24 + $0x368] sm:$0xff]  ;;  %v704_v34 = vpack.c.bf16 %v245_v27, %v244_v26 }
  0x4e   : > { %942 = vst [vmem:[%s1542_s17 + $0x110] sm:$0xff] %v686_v44  ;;  %v250_v35 = vld [vmem:[%s1526_s24 + $0x370] sm:$0xff]  ;;  %v251_v36 = vld [vmem:[%s1526_s24 + $0x378] sm:$0xff]  ;;  %v705_v37 = vpack.c.bf16 %v247_v30, %v246_v29  ;;  %v252_v38 = vld [vmem:[%s1526_s24 + $0x380] sm:$0xff]  ;;  %v706_v40 = vpack.c.bf16 %v249_v33, %v248_v32 }
  0x4f   : > { %943 = vst [vmem:[%s1542_s17 + $0x118] sm:$0xff] %v687_v47  ;;  %v253_v39 = vld [vmem:[%s1526_s24 + $0x388] sm:$0xff]  ;;  %v254_v41 = vld [vmem:[%s1526_s24 + $0x390] sm:$0xff]  ;;  %v255_v42 = vld [vmem:[%s1526_s24 + $0x398] sm:$0xff]  ;;  %v707_v43 = vpack.c.bf16 %v251_v36, %v250_v35 }
  0x50   : > { %944 = vst [vmem:[%s1542_s17 + $0x120] sm:$0xff] %v688_v50  ;;  %v256_v44 = vld [vmem:[%s1526_s24 + $0x3a0] sm:$0xff]  ;;  %v257_v45 = vld [vmem:[%s1526_s24 + $0x3a8] sm:$0xff]  ;;  %v708_v46 = vpack.c.bf16 %v253_v39, %v252_v38  ;;  %v258_v47 = vld [vmem:[%s1526_s24 + $0x3b0] sm:$0xff]  ;;  %v709_v49 = vpack.c.bf16 %v255_v42, %v254_v41 }
  0x51   : > { %945 = vst [vmem:[%s1542_s17 + $0x128] sm:$0xff] %v689_v53  ;;  %v259_v48 = vld [vmem:[%s1526_s24 + $0x3b8] sm:$0xff]  ;;  %v260_v50 = vld [vmem:[%s1526_s24 + $0x3c0] sm:$0xff]  ;;  %v261_v51 = vld [vmem:[%s1526_s24 + $0x3c8] sm:$0xff]  ;;  %v710_v52 = vpack.c.bf16 %v257_v45, %v256_v44 }
  0x52   : > { %946 = vst [vmem:[%s1542_s17 + $0x130] sm:$0xff] %v690_v56  ;;  %v262_v53 = vld [vmem:[%s1526_s24 + $0x3d0] sm:$0xff]  ;;  %v263_v54 = vld [vmem:[%s1526_s24 + $0x3d8] sm:$0xff]  ;;  %v711_v55 = vpack.c.bf16 %v259_v48, %v258_v47  ;;  %v264_v56 = vld [vmem:[%s1526_s24 + $0x3e0] sm:$0xff]  ;;  %v712_v58 = vpack.c.bf16 %v261_v51, %v260_v50 }
  0x53   : > { %947 = vst [vmem:[%s1542_s17 + $0x138] sm:$0xff] %v691_v59  ;;  %v265_v57 = vld [vmem:[%s1526_s24 + $0x3e8] sm:$0xff]  ;;  %v266_v59 = vld [vmem:[%s1526_s24 + $0x3f0] sm:$0xff]  ;;  %v267_v60 = vld [vmem:[%s1526_s24 + $0x3f8] sm:$0xff]  ;;  %v713_v61 = vpack.c.bf16 %v263_v54, %v262_v53 }
  0x54   : > { %948 = vst [vmem:[%s1542_s17 + $0x140] sm:$0xff] %v692_v62  ;;  %v268_v62 = vld [vmem:[%s1526_s24 + $0x400] sm:$0xff]  ;;  %v269_v63 = vld [vmem:[%s1526_s24 + $0x408] sm:$0xff]  ;;  %v714_v0 = vpack.c.bf16 %v265_v57, %v264_v56  ;;  %v271_v2 = vld [vmem:[%s1526_s24 + $0x418] sm:$0xff]  ;;  %v715_v3 = vpack.c.bf16 %v267_v60, %v266_v59 }
  0x55   : > { %949 = vst [vmem:[%s1542_s17 + $0x148] sm:$0xff] %v693_v1  ;;  %v270_v1 = vld [vmem:[%s1526_s24 + $0x410] sm:$0xff]  ;;  %v273_v5 = vld [vmem:[%s1526_s24 + $0x428] sm:$0xff]  ;;  %v716_v6 = vpack.c.bf16 %v269_v63, %v268_v62  ;;  %v275_v8 = vld [vmem:[%s1526_s24 + $0x438] sm:$0xff] }
  0x56   : > { %950 = vst [vmem:[%s1542_s17 + $0x150] sm:$0xff] %v694_v4  ;;  %v272_v4 = vld [vmem:[%s1526_s24 + $0x420] sm:$0xff]  ;;  %v717_v9 = vpack.c.bf16 %v271_v2, %v270_v1  ;;  %v277_v11 = vld [vmem:[%s1526_s24 + $0x448] sm:$0xff]  ;;  %v279_v14 = vld [vmem:[%s1526_s24 + $0x458] sm:$0xff] }
  0x57   : > { %951 = vst [vmem:[%s1542_s17 + $0x158] sm:$0xff] %v695_v7  ;;  %v274_v7 = vld [vmem:[%s1526_s24 + $0x430] sm:$0xff]  ;;  %v718_v12 = vpack.c.bf16 %v273_v5, %v272_v4  ;;  %v281_v17 = vld [vmem:[%s1526_s24 + $0x468] sm:$0xff]  ;;  %v283_v20 = vld [vmem:[%s1526_s24 + $0x478] sm:$0xff] }
  0x58   : > { %952 = vst [vmem:[%s1542_s17 + $0x160] sm:$0xff] %v696_v10  ;;  %v276_v10 = vld [vmem:[%s1526_s24 + $0x440] sm:$0xff]  ;;  %v719_v15 = vpack.c.bf16 %v275_v8, %v274_v7  ;;  %v285_v23 = vld [vmem:[%s1526_s24 + $0x488] sm:$0xff]  ;;  %v287_v26 = vld [vmem:[%s1526_s24 + $0x498] sm:$0xff] }
  0x59   : > { %953 = vst [vmem:[%s1542_s17 + $0x168] sm:$0xff] %v697_v13  ;;  %v278_v13 = vld [vmem:[%s1526_s24 + $0x450] sm:$0xff]  ;;  %v720_v18 = vpack.c.bf16 %v277_v11, %v276_v10  ;;  %v289_v29 = vld [vmem:[%s1526_s24 + $0x4a8] sm:$0xff]  ;;  %v291_v32 = vld [vmem:[%s1526_s24 + $0x4b8] sm:$0xff] }
  0x5a   : > { %954 = vst [vmem:[%s1542_s17 + $0x170] sm:$0xff] %v698_v16  ;;  %v280_v16 = vld [vmem:[%s1526_s24 + $0x460] sm:$0xff]  ;;  %v721_v21 = vpack.c.bf16 %v279_v14, %v278_v13  ;;  %v293_v35 = vld [vmem:[%s1526_s24 + $0x4c8] sm:$0xff]  ;;  %v295_v38 = vld [vmem:[%s1526_s24 + $0x4d8] sm:$0xff] }
  0x5b   : > { %955 = vst [vmem:[%s1542_s17 + $0x178] sm:$0xff] %v699_v19  ;;  %v282_v19 = vld [vmem:[%s1526_s24 + $0x470] sm:$0xff]  ;;  %v722_v24 = vpack.c.bf16 %v281_v17, %v280_v16  ;;  %v297_v41 = vld [vmem:[%s1526_s24 + $0x4e8] sm:$0xff]  ;;  %v299_v44 = vld [vmem:[%s1526_s24 + $0x4f8] sm:$0xff] }
  0x5c   : > { %956 = vst [vmem:[%s1542_s17 + $0x180] sm:$0xff] %v700_v22  ;;  %v284_v22 = vld [vmem:[%s1526_s24 + $0x480] sm:$0xff]  ;;  %v723_v27 = vpack.c.bf16 %v283_v20, %v282_v19  ;;  %v301_v47 = vld [vmem:[%s1526_s24 + $0x508] sm:$0xff]  ;;  %v303_v50 = vld [vmem:[%s1526_s24 + $0x518] sm:$0xff] }
  0x5d   : > { %957 = vst [vmem:[%s1542_s17 + $0x188] sm:$0xff] %v701_v25  ;;  %v286_v25 = vld [vmem:[%s1526_s24 + $0x490] sm:$0xff]  ;;  %v724_v30 = vpack.c.bf16 %v285_v23, %v284_v22  ;;  %v305_v53 = vld [vmem:[%s1526_s24 + $0x528] sm:$0xff]  ;;  %v307_v56 = vld [vmem:[%s1526_s24 + $0x538] sm:$0xff] }
  0x5e   : > { %958 = vst [vmem:[%s1542_s17 + $0x190] sm:$0xff] %v702_v28  ;;  %v288_v28 = vld [vmem:[%s1526_s24 + $0x4a0] sm:$0xff]  ;;  %v725_v33 = vpack.c.bf16 %v287_v26, %v286_v25  ;;  %v309_v59 = vld [vmem:[%s1526_s24 + $0x548] sm:$0xff]  ;;  %v311_v62 = vld [vmem:[%s1526_s24 + $0x558] sm:$0xff] }
  0x5f   : > { %959 = vst [vmem:[%s1542_s17 + $0x198] sm:$0xff] %v703_v31  ;;  %v290_v31 = vld [vmem:[%s1526_s24 + $0x4b0] sm:$0xff]  ;;  %v726_v36 = vpack.c.bf16 %v289_v29, %v288_v28  ;;  %v313_v1 = vld [vmem:[%s1526_s24 + $0x568] sm:$0xff]  ;;  %v315_v4 = vld [vmem:[%s1526_s24 + $0x578] sm:$0xff] }
  0x60   : > { %960 = vst [vmem:[%s1542_s17 + $0x1a0] sm:$0xff] %v704_v34  ;;  %v292_v34 = vld [vmem:[%s1526_s24 + $0x4c0] sm:$0xff]  ;;  %v727_v39 = vpack.c.bf16 %v291_v32, %v290_v31  ;;  %v317_v7 = vld [vmem:[%s1526_s24 + $0x588] sm:$0xff]  ;;  %v319_v10 = vld [vmem:[%s1526_s24 + $0x598] sm:$0xff] }
  0x61   : > { %961 = vst [vmem:[%s1542_s17 + $0x1a8] sm:$0xff] %v705_v37  ;;  %v294_v37 = vld [vmem:[%s1526_s24 + $0x4d0] sm:$0xff]  ;;  %v728_v42 = vpack.c.bf16 %v293_v35, %v292_v34  ;;  %v321_v13 = vld [vmem:[%s1526_s24 + $0x5a8] sm:$0xff]  ;;  %v323_v16 = vld [vmem:[%s1526_s24 + $0x5b8] sm:$0xff] }
  0x62   : > { %962 = vst [vmem:[%s1542_s17 + $0x1b0] sm:$0xff] %v706_v40  ;;  %v296_v40 = vld [vmem:[%s1526_s24 + $0x4e0] sm:$0xff]  ;;  %v729_v45 = vpack.c.bf16 %v295_v38, %v294_v37  ;;  %v325_v19 = vld [vmem:[%s1526_s24 + $0x5c8] sm:$0xff]  ;;  %v327_v22 = vld [vmem:[%s1526_s24 + $0x5d8] sm:$0xff] }
  0x63   : > { %963 = vst [vmem:[%s1542_s17 + $0x1b8] sm:$0xff] %v707_v43  ;;  %v298_v43 = vld [vmem:[%s1526_s24 + $0x4f0] sm:$0xff]  ;;  %v730_v48 = vpack.c.bf16 %v297_v41, %v296_v40  ;;  %v329_v25 = vld [vmem:[%s1526_s24 + $0x5e8] sm:$0xff]  ;;  %v331_v28 = vld [vmem:[%s1526_s24 + $0x5f8] sm:$0xff] }
  0x64   : > { %964 = vst [vmem:[%s1542_s17 + $0x1c0] sm:$0xff] %v708_v46  ;;  %v300_v46 = vld [vmem:[%s1526_s24 + $0x500] sm:$0xff]  ;;  %v731_v51 = vpack.c.bf16 %v299_v44, %v298_v43  ;;  %v333_v31 = vld [vmem:[%s1526_s24 + $0x608] sm:$0xff]  ;;  %v335_v34 = vld [vmem:[%s1526_s24 + $0x618] sm:$0xff] }
  0x65   : > { %965 = vst [vmem:[%s1542_s17 + $0x1c8] sm:$0xff] %v709_v49  ;;  %v302_v49 = vld [vmem:[%s1526_s24 + $0x510] sm:$0xff]  ;;  %v732_v54 = vpack.c.bf16 %v301_v47, %v300_v46  ;;  %v337_v37 = vld [vmem:[%s1526_s24 + $0x628] sm:$0xff]  ;;  %v339_v40 = vld [vmem:[%s1526_s24 + $0x638] sm:$0xff] }
  0x66   : > { %966 = vst [vmem:[%s1542_s17 + $0x1d0] sm:$0xff] %v710_v52  ;;  %v304_v52 = vld [vmem:[%s1526_s24 + $0x520] sm:$0xff]  ;;  %v733_v57 = vpack.c.bf16 %v303_v50, %v302_v49  ;;  %v341_v43 = vld [vmem:[%s1526_s24 + $0x648] sm:$0xff]  ;;  %v343_v46 = vld [vmem:[%s1526_s24 + $0x658] sm:$0xff] }
  0x67   : > { %967 = vst [vmem:[%s1542_s17 + $0x1d8] sm:$0xff] %v711_v55  ;;  %v306_v55 = vld [vmem:[%s1526_s24 + $0x530] sm:$0xff]  ;;  %v734_v60 = vpack.c.bf16 %v305_v53, %v304_v52  ;;  %v345_v49 = vld [vmem:[%s1526_s24 + $0x668] sm:$0xff]  ;;  %v347_v52 = vld [vmem:[%s1526_s24 + $0x678] sm:$0xff] }
  0x68   : > { %968 = vst [vmem:[%s1542_s17 + $0x1e0] sm:$0xff] %v712_v58  ;;  %v308_v58 = vld [vmem:[%s1526_s24 + $0x540] sm:$0xff]  ;;  %v735_v63 = vpack.c.bf16 %v307_v56, %v306_v55  ;;  %v349_v55 = vld [vmem:[%s1526_s24 + $0x688] sm:$0xff] }
  0x69   : > { %969 = vst [vmem:[%s1542_s17 + $0x1e8] sm:$0xff] %v713_v61  ;;  %v310_v61 = vld [vmem:[%s1526_s24 + $0x550] sm:$0xff]  ;;  %v736_v2 = vpack.c.bf16 %v309_v59, %v308_v58  ;;  %v351_v58 = vld [vmem:[%s1526_s24 + $0x698] sm:$0xff] }
  0x6a   : > { %970 = vst [vmem:[%s1542_s17 + $0x1f0] sm:$0xff] %v714_v0  ;;  %v312_v0 = vld [vmem:[%s1526_s24 + $0x560] sm:$0xff]  ;;  %v737_v5 = vpack.c.bf16 %v311_v62, %v310_v61  ;;  %v353_v61 = vld [vmem:[%s1526_s24 + $0x6a8] sm:$0xff] }
  0x6b   : > { %971 = vst [vmem:[%s1542_s17 + $0x1f8] sm:$0xff] %v715_v3  ;;  %v314_v3 = vld [vmem:[%s1526_s24 + $0x570] sm:$0xff]  ;;  %v738_v8 = vpack.c.bf16 %v313_v1, %v312_v0  ;;  %v355_v0 = vld [vmem:[%s1526_s24 + $0x6b8] sm:$0xff] }
  0x6c   : > { %972 = vst [vmem:[%s1542_s17 + $0x200] sm:$0xff] %v716_v6  ;;  %v316_v6 = vld [vmem:[%s1526_s24 + $0x580] sm:$0xff]  ;;  %v739_v11 = vpack.c.bf16 %v315_v4, %v314_v3  ;;  %v357_v3 = vld [vmem:[%s1526_s24 + $0x6c8] sm:$0xff] }
  0x6d   : > { %973 = vst [vmem:[%s1542_s17 + $0x208] sm:$0xff] %v717_v9  ;;  %v318_v9 = vld [vmem:[%s1526_s24 + $0x590] sm:$0xff]  ;;  %v740_v14 = vpack.c.bf16 %v317_v7, %v316_v6  ;;  %v359_v6 = vld [vmem:[%s1526_s24 + $0x6d8] sm:$0xff] }
  0x6e   : > { %974 = vst [vmem:[%s1542_s17 + $0x210] sm:$0xff] %v718_v12  ;;  %v320_v12 = vld [vmem:[%s1526_s24 + $0x5a0] sm:$0xff]  ;;  %v741_v17 = vpack.c.bf16 %v319_v10, %v318_v9  ;;  %v361_v9 = vld [vmem:[%s1526_s24 + $0x6e8] sm:$0xff] }
  0x6f   : > { %975 = vst [vmem:[%s1542_s17 + $0x218] sm:$0xff] %v719_v15  ;;  %v322_v15 = vld [vmem:[%s1526_s24 + $0x5b0] sm:$0xff]  ;;  %v742_v20 = vpack.c.bf16 %v321_v13, %v320_v12  ;;  %v363_v12 = vld [vmem:[%s1526_s24 + $0x6f8] sm:$0xff] }
  0x70   : > { %976 = vst [vmem:[%s1542_s17 + $0x220] sm:$0xff] %v720_v18  ;;  %v324_v18 = vld [vmem:[%s1526_s24 + $0x5c0] sm:$0xff]  ;;  %v743_v23 = vpack.c.bf16 %v323_v16, %v322_v15  ;;  %v365_v15 = vld [vmem:[%s1526_s24 + $0x708] sm:$0xff] }
  0x71   : > { %977 = vst [vmem:[%s1542_s17 + $0x228] sm:$0xff] %v721_v21  ;;  %v326_v21 = vld [vmem:[%s1526_s24 + $0x5d0] sm:$0xff]  ;;  %v744_v26 = vpack.c.bf16 %v325_v19, %v324_v18  ;;  %v367_v18 = vld [vmem:[%s1526_s24 + $0x718] sm:$0xff] }
  0x72   : > { %978 = vst [vmem:[%s1542_s17 + $0x230] sm:$0xff] %v722_v24  ;;  %v328_v24 = vld [vmem:[%s1526_s24 + $0x5e0] sm:$0xff]  ;;  %v745_v29 = vpack.c.bf16 %v327_v22, %v326_v21  ;;  %v369_v21 = vld [vmem:[%s1526_s24 + $0x728] sm:$0xff] }
  0x73   : > { %979 = vst [vmem:[%s1542_s17 + $0x238] sm:$0xff] %v723_v27  ;;  %v330_v27 = vld [vmem:[%s1526_s24 + $0x5f0] sm:$0xff]  ;;  %v746_v32 = vpack.c.bf16 %v329_v25, %v328_v24  ;;  %v371_v24 = vld [vmem:[%s1526_s24 + $0x738] sm:$0xff] }
  0x74   : > { %980 = vst [vmem:[%s1542_s17 + $0x240] sm:$0xff] %v724_v30  ;;  %v332_v30 = vld [vmem:[%s1526_s24 + $0x600] sm:$0xff]  ;;  %v747_v35 = vpack.c.bf16 %v331_v28, %v330_v27  ;;  %v373_v27 = vld [vmem:[%s1526_s24 + $0x748] sm:$0xff] }
  0x75   : > { %981 = vst [vmem:[%s1542_s17 + $0x248] sm:$0xff] %v725_v33  ;;  %v334_v33 = vld [vmem:[%s1526_s24 + $0x610] sm:$0xff]  ;;  %v748_v38 = vpack.c.bf16 %v333_v31, %v332_v30  ;;  %v375_v30 = vld [vmem:[%s1526_s24 + $0x758] sm:$0xff] }
  0x76   : > { %982 = vst [vmem:[%s1542_s17 + $0x250] sm:$0xff] %v726_v36  ;;  %v336_v36 = vld [vmem:[%s1526_s24 + $0x620] sm:$0xff]  ;;  %v749_v41 = vpack.c.bf16 %v335_v34, %v334_v33  ;;  %v377_v33 = vld [vmem:[%s1526_s24 + $0x768] sm:$0xff] }
  0x77   : > { %983 = vst [vmem:[%s1542_s17 + $0x258] sm:$0xff] %v727_v39  ;;  %v338_v39 = vld [vmem:[%s1526_s24 + $0x630] sm:$0xff]  ;;  %v750_v44 = vpack.c.bf16 %v337_v37, %v336_v36  ;;  %v379_v36 = vld [vmem:[%s1526_s24 + $0x778] sm:$0xff] }
  0x78   : > { %984 = vst [vmem:[%s1542_s17 + $0x260] sm:$0xff] %v728_v42  ;;  %v340_v42 = vld [vmem:[%s1526_s24 + $0x640] sm:$0xff]  ;;  %v751_v47 = vpack.c.bf16 %v339_v40, %v338_v39  ;;  %v381_v39 = vld [vmem:[%s1526_s24 + $0x788] sm:$0xff] }
  0x79   : > { %985 = vst [vmem:[%s1542_s17 + $0x268] sm:$0xff] %v729_v45  ;;  %v342_v45 = vld [vmem:[%s1526_s24 + $0x650] sm:$0xff]  ;;  %v752_v50 = vpack.c.bf16 %v341_v43, %v340_v42  ;;  %v383_v42 = vld [vmem:[%s1526_s24 + $0x798] sm:$0xff] }
  0x7a   : > { %986 = vst [vmem:[%s1542_s17 + $0x270] sm:$0xff] %v730_v48  ;;  %v344_v48 = vld [vmem:[%s1526_s24 + $0x660] sm:$0xff]  ;;  %v753_v53 = vpack.c.bf16 %v343_v46, %v342_v45  ;;  %v385_v45 = vld [vmem:[%s1526_s24 + $0x7a8] sm:$0xff] }
  0x7b   : > { %987 = vst [vmem:[%s1542_s17 + $0x278] sm:$0xff] %v731_v51  ;;  %v346_v51 = vld [vmem:[%s1526_s24 + $0x670] sm:$0xff]  ;;  %v754_v56 = vpack.c.bf16 %v345_v49, %v344_v48  ;;  %v387_v48 = vld [vmem:[%s1526_s24 + $0x7b8] sm:$0xff] }
  0x7c   : > { %988 = vst [vmem:[%s1542_s17 + $0x280] sm:$0xff] %v732_v54  ;;  %v348_v54 = vld [vmem:[%s1526_s24 + $0x680] sm:$0xff]  ;;  %v755_v59 = vpack.c.bf16 %v347_v52, %v346_v51  ;;  %v389_v51 = vld [vmem:[%s1526_s24 + $0x7c8] sm:$0xff] }
  0x7d   : > { %989 = vst [vmem:[%s1542_s17 + $0x288] sm:$0xff] %v733_v57  ;;  %v350_v57 = vld [vmem:[%s1526_s24 + $0x690] sm:$0xff]  ;;  %v756_v62 = vpack.c.bf16 %v349_v55, %v348_v54  ;;  %v391_v54 = vld [vmem:[%s1526_s24 + $0x7d8] sm:$0xff] }
  0x7e   : > { %990 = vst [vmem:[%s1542_s17 + $0x290] sm:$0xff] %v734_v60  ;;  %v352_v60 = vld [vmem:[%s1526_s24 + $0x6a0] sm:$0xff]  ;;  %v757_v1 = vpack.c.bf16 %v351_v58, %v350_v57  ;;  %v393_v57 = vld [vmem:[%s1526_s24 + $0x7e8] sm:$0xff] }
  0x7f   : > { %991 = vst [vmem:[%s1542_s17 + $0x298] sm:$0xff] %v735_v63  ;;  %v354_v63 = vld [vmem:[%s1526_s24 + $0x6b0] sm:$0xff]  ;;  %v758_v4 = vpack.c.bf16 %v353_v61, %v352_v60  ;;  %v395_v60 = vld [vmem:[%s1526_s24 + $0x7f8] sm:$0xff] }
  0x80   : > { %992 = vst [vmem:[%s1542_s17 + $0x2a0] sm:$0xff] %v736_v2  ;;  %v356_v2 = vld [vmem:[%s1526_s24 + $0x6c0] sm:$0xff]  ;;  %v759_v7 = vpack.c.bf16 %v355_v0, %v354_v63  ;;  %v397_v63 = vld [vmem:[%s1526_s24 + $0x808] sm:$0xff] }
  0x81   : > { %993 = vst [vmem:[%s1542_s17 + $0x2a8] sm:$0xff] %v737_v5  ;;  %v358_v5 = vld [vmem:[%s1526_s24 + $0x6d0] sm:$0xff]  ;;  %v760_v10 = vpack.c.bf16 %v357_v3, %v356_v2  ;;  %v399_v2 = vld [vmem:[%s1526_s24 + $0x818] sm:$0xff] }
  0x82   : > { %994 = vst [vmem:[%s1542_s17 + $0x2b0] sm:$0xff] %v738_v8  ;;  %v360_v8 = vld [vmem:[%s1526_s24 + $0x6e0] sm:$0xff]  ;;  %v761_v13 = vpack.c.bf16 %v359_v6, %v358_v5  ;;  %v401_v5 = vld [vmem:[%s1526_s24 + $0x828] sm:$0xff] }
  0x83   : > { %995 = vst [vmem:[%s1542_s17 + $0x2b8] sm:$0xff] %v739_v11  ;;  %v362_v11 = vld [vmem:[%s1526_s24 + $0x6f0] sm:$0xff]  ;;  %v762_v16 = vpack.c.bf16 %v361_v9, %v360_v8  ;;  %v403_v8 = vld [vmem:[%s1526_s24 + $0x838] sm:$0xff] }
  0x84   : > { %996 = vst [vmem:[%s1542_s17 + $0x2c0] sm:$0xff] %v740_v14  ;;  %v364_v14 = vld [vmem:[%s1526_s24 + $0x700] sm:$0xff]  ;;  %v763_v19 = vpack.c.bf16 %v363_v12, %v362_v11  ;;  %v405_v11 = vld [vmem:[%s1526_s24 + $0x848] sm:$0xff] }
  0x85   : > { %997 = vst [vmem:[%s1542_s17 + $0x2c8] sm:$0xff] %v741_v17  ;;  %v366_v17 = vld [vmem:[%s1526_s24 + $0x710] sm:$0xff]  ;;  %v764_v22 = vpack.c.bf16 %v365_v15, %v364_v14  ;;  %v407_v14 = vld [vmem:[%s1526_s24 + $0x858] sm:$0xff] }
  0x86   : > { %998 = vst [vmem:[%s1542_s17 + $0x2d0] sm:$0xff] %v742_v20  ;;  %v368_v20 = vld [vmem:[%s1526_s24 + $0x720] sm:$0xff]  ;;  %v765_v25 = vpack.c.bf16 %v367_v18, %v366_v17  ;;  %v409_v17 = vld [vmem:[%s1526_s24 + $0x868] sm:$0xff] }
  0x87   : > { %999 = vst [vmem:[%s1542_s17 + $0x2d8] sm:$0xff] %v743_v23  ;;  %v370_v23 = vld [vmem:[%s1526_s24 + $0x730] sm:$0xff]  ;;  %v766_v28 = vpack.c.bf16 %v369_v21, %v368_v20  ;;  %v411_v20 = vld [vmem:[%s1526_s24 + $0x878] sm:$0xff] }
  0x88   : > { %1000 = vst [vmem:[%s1542_s17 + $0x2e0] sm:$0xff] %v744_v26  ;;  %v372_v26 = vld [vmem:[%s1526_s24 + $0x740] sm:$0xff]  ;;  %v767_v31 = vpack.c.bf16 %v371_v24, %v370_v23  ;;  %v413_v23 = vld [vmem:[%s1526_s24 + $0x888] sm:$0xff] }
  0x89   : > { %1001 = vst [vmem:[%s1542_s17 + $0x2e8] sm:$0xff] %v745_v29  ;;  %v374_v29 = vld [vmem:[%s1526_s24 + $0x750] sm:$0xff]  ;;  %v768_v34 = vpack.c.bf16 %v373_v27, %v372_v26  ;;  %v415_v26 = vld [vmem:[%s1526_s24 + $0x898] sm:$0xff] }
  0x8a   : > { %1002 = vst [vmem:[%s1542_s17 + $0x2f0] sm:$0xff] %v746_v32  ;;  %v376_v32 = vld [vmem:[%s1526_s24 + $0x760] sm:$0xff]  ;;  %v769_v37 = vpack.c.bf16 %v375_v30, %v374_v29  ;;  %v417_v29 = vld [vmem:[%s1526_s24 + $0x8a8] sm:$0xff] }
  0x8b   : > { %1003 = vst [vmem:[%s1542_s17 + $0x2f8] sm:$0xff] %v747_v35  ;;  %v378_v35 = vld [vmem:[%s1526_s24 + $0x770] sm:$0xff]  ;;  %v770_v40 = vpack.c.bf16 %v377_v33, %v376_v32  ;;  %v419_v32 = vld [vmem:[%s1526_s24 + $0x8b8] sm:$0xff] }
  0x8c   : > { %1004 = vst [vmem:[%s1542_s17 + $0x300] sm:$0xff] %v748_v38  ;;  %v380_v38 = vld [vmem:[%s1526_s24 + $0x780] sm:$0xff]  ;;  %v771_v43 = vpack.c.bf16 %v379_v36, %v378_v35  ;;  %v421_v35 = vld [vmem:[%s1526_s24 + $0x8c8] sm:$0xff] }
  0x8d   : > { %1005 = vst [vmem:[%s1542_s17 + $0x308] sm:$0xff] %v749_v41  ;;  %v382_v41 = vld [vmem:[%s1526_s24 + $0x790] sm:$0xff]  ;;  %v772_v46 = vpack.c.bf16 %v381_v39, %v380_v38  ;;  %v423_v38 = vld [vmem:[%s1526_s24 + $0x8d8] sm:$0xff] }
  0x8e   : > { %1006 = vst [vmem:[%s1542_s17 + $0x310] sm:$0xff] %v750_v44  ;;  %v384_v44 = vld [vmem:[%s1526_s24 + $0x7a0] sm:$0xff]  ;;  %v773_v49 = vpack.c.bf16 %v383_v42, %v382_v41  ;;  %v425_v41 = vld [vmem:[%s1526_s24 + $0x8e8] sm:$0xff] }
  0x8f   : > { %1007 = vst [vmem:[%s1542_s17 + $0x318] sm:$0xff] %v751_v47  ;;  %v386_v47 = vld [vmem:[%s1526_s24 + $0x7b0] sm:$0xff]  ;;  %v774_v52 = vpack.c.bf16 %v385_v45, %v384_v44  ;;  %v427_v44 = vld [vmem:[%s1526_s24 + $0x8f8] sm:$0xff] }
  0x90   : > { %1008 = vst [vmem:[%s1542_s17 + $0x320] sm:$0xff] %v752_v50  ;;  %v388_v50 = vld [vmem:[%s1526_s24 + $0x7c0] sm:$0xff]  ;;  %v775_v55 = vpack.c.bf16 %v387_v48, %v386_v47  ;;  %v429_v47 = vld [vmem:[%s1526_s24 + $0x908] sm:$0xff] }
  0x91   : > { %1009 = vst [vmem:[%s1542_s17 + $0x328] sm:$0xff] %v753_v53  ;;  %v390_v53 = vld [vmem:[%s1526_s24 + $0x7d0] sm:$0xff]  ;;  %v776_v58 = vpack.c.bf16 %v389_v51, %v388_v50  ;;  %v431_v50 = vld [vmem:[%s1526_s24 + $0x918] sm:$0xff] }
  0x92   : > { %1010 = vst [vmem:[%s1542_s17 + $0x330] sm:$0xff] %v754_v56  ;;  %v392_v56 = vld [vmem:[%s1526_s24 + $0x7e0] sm:$0xff]  ;;  %v777_v61 = vpack.c.bf16 %v391_v54, %v390_v53  ;;  %v433_v53 = vld [vmem:[%s1526_s24 + $0x928] sm:$0xff] }
  0x93   : > { %1011 = vst [vmem:[%s1542_s17 + $0x338] sm:$0xff] %v755_v59  ;;  %v394_v59 = vld [vmem:[%s1526_s24 + $0x7f0] sm:$0xff]  ;;  %v778_v0 = vpack.c.bf16 %v393_v57, %v392_v56  ;;  %v435_v56 = vld [vmem:[%s1526_s24 + $0x938] sm:$0xff] }
  0x94   : > { %1012 = vst [vmem:[%s1542_s17 + $0x340] sm:$0xff] %v756_v62  ;;  %v396_v62 = vld [vmem:[%s1526_s24 + $0x800] sm:$0xff]  ;;  %v779_v3 = vpack.c.bf16 %v395_v60, %v394_v59  ;;  %v437_v59 = vld [vmem:[%s1526_s24 + $0x948] sm:$0xff] }
  0x95   : > { %1013 = vst [vmem:[%s1542_s17 + $0x348] sm:$0xff] %v757_v1  ;;  %v398_v1 = vld [vmem:[%s1526_s24 + $0x810] sm:$0xff]  ;;  %v780_v6 = vpack.c.bf16 %v397_v63, %v396_v62  ;;  %v439_v62 = vld [vmem:[%s1526_s24 + $0x958] sm:$0xff] }
  0x96   : > { %1014 = vst [vmem:[%s1542_s17 + $0x350] sm:$0xff] %v758_v4  ;;  %v400_v4 = vld [vmem:[%s1526_s24 + $0x820] sm:$0xff]  ;;  %v781_v9 = vpack.c.bf16 %v399_v2, %v398_v1  ;;  %v441_v1 = vld [vmem:[%s1526_s24 + $0x968] sm:$0xff] }
  0x97   : > { %1015 = vst [vmem:[%s1542_s17 + $0x358] sm:$0xff] %v759_v7  ;;  %v402_v7 = vld [vmem:[%s1526_s24 + $0x830] sm:$0xff]  ;;  %v782_v12 = vpack.c.bf16 %v401_v5, %v400_v4  ;;  %v443_v4 = vld [vmem:[%s1526_s24 + $0x978] sm:$0xff] }
  0x98   : > { %1016 = vst [vmem:[%s1542_s17 + $0x360] sm:$0xff] %v760_v10  ;;  %v404_v10 = vld [vmem:[%s1526_s24 + $0x840] sm:$0xff]  ;;  %v783_v15 = vpack.c.bf16 %v403_v8, %v402_v7  ;;  %v445_v7 = vld [vmem:[%s1526_s24 + $0x988] sm:$0xff] }
  0x99   : > { %1017 = vst [vmem:[%s1542_s17 + $0x368] sm:$0xff] %v761_v13  ;;  %v406_v13 = vld [vmem:[%s1526_s24 + $0x850] sm:$0xff]  ;;  %v784_v18 = vpack.c.bf16 %v405_v11, %v404_v10  ;;  %v447_v10 = vld [vmem:[%s1526_s24 + $0x998] sm:$0xff] }
  0x9a   : > { %1018 = vst [vmem:[%s1542_s17 + $0x370] sm:$0xff] %v762_v16  ;;  %v408_v16 = vld [vmem:[%s1526_s24 + $0x860] sm:$0xff]  ;;  %v785_v21 = vpack.c.bf16 %v407_v14, %v406_v13  ;;  %v449_v13 = vld [vmem:[%s1526_s24 + $0x9a8] sm:$0xff] }
  0x9b   : > { %1019 = vst [vmem:[%s1542_s17 + $0x378] sm:$0xff] %v763_v19  ;;  %v410_v19 = vld [vmem:[%s1526_s24 + $0x870] sm:$0xff]  ;;  %v786_v24 = vpack.c.bf16 %v409_v17, %v408_v16  ;;  %v451_v16 = vld [vmem:[%s1526_s24 + $0x9b8] sm:$0xff] }
  0x9c   : > { %1020 = vst [vmem:[%s1542_s17 + $0x380] sm:$0xff] %v764_v22  ;;  %v412_v22 = vld [vmem:[%s1526_s24 + $0x880] sm:$0xff]  ;;  %v787_v27 = vpack.c.bf16 %v411_v20, %v410_v19  ;;  %v453_v19 = vld [vmem:[%s1526_s24 + $0x9c8] sm:$0xff] }
  0x9d   : > { %1021 = vst [vmem:[%s1542_s17 + $0x388] sm:$0xff] %v765_v25  ;;  %v414_v25 = vld [vmem:[%s1526_s24 + $0x890] sm:$0xff]  ;;  %v788_v30 = vpack.c.bf16 %v413_v23, %v412_v22  ;;  %v455_v22 = vld [vmem:[%s1526_s24 + $0x9d8] sm:$0xff] }
  0x9e   : > { %1022 = vst [vmem:[%s1542_s17 + $0x390] sm:$0xff] %v766_v28  ;;  %v416_v28 = vld [vmem:[%s1526_s24 + $0x8a0] sm:$0xff]  ;;  %v789_v33 = vpack.c.bf16 %v415_v26, %v414_v25  ;;  %v457_v25 = vld [vmem:[%s1526_s24 + $0x9e8] sm:$0xff] }
  0x9f   : > { %1023 = vst [vmem:[%s1542_s17 + $0x398] sm:$0xff] %v767_v31  ;;  %v418_v31 = vld [vmem:[%s1526_s24 + $0x8b0] sm:$0xff]  ;;  %v790_v36 = vpack.c.bf16 %v417_v29, %v416_v28  ;;  %v459_v28 = vld [vmem:[%s1526_s24 + $0x9f8] sm:$0xff] }
  0xa0   : > { %1024 = vst [vmem:[%s1542_s17 + $0x3a0] sm:$0xff] %v768_v34  ;;  %v420_v34 = vld [vmem:[%s1526_s24 + $0x8c0] sm:$0xff]  ;;  %v791_v39 = vpack.c.bf16 %v419_v32, %v418_v31  ;;  %v461_v31 = vld [vmem:[%s1526_s24 + $0xa08] sm:$0xff] }
  0xa1   : > { %1025 = vst [vmem:[%s1542_s17 + $0x3a8] sm:$0xff] %v769_v37  ;;  %v422_v37 = vld [vmem:[%s1526_s24 + $0x8d0] sm:$0xff]  ;;  %v792_v42 = vpack.c.bf16 %v421_v35, %v420_v34  ;;  %v463_v34 = vld [vmem:[%s1526_s24 + $0xa18] sm:$0xff] }
  0xa2   : > { %1026 = vst [vmem:[%s1542_s17 + $0x3b0] sm:$0xff] %v770_v40  ;;  %v424_v40 = vld [vmem:[%s1526_s24 + $0x8e0] sm:$0xff]  ;;  %v793_v45 = vpack.c.bf16 %v423_v38, %v422_v37  ;;  %v465_v37 = vld [vmem:[%s1526_s24 + $0xa28] sm:$0xff] }
  0xa3   : > { %1027 = vst [vmem:[%s1542_s17 + $0x3b8] sm:$0xff] %v771_v43  ;;  %v426_v43 = vld [vmem:[%s1526_s24 + $0x8f0] sm:$0xff]  ;;  %v794_v48 = vpack.c.bf16 %v425_v41, %v424_v40  ;;  %v467_v40 = vld [vmem:[%s1526_s24 + $0xa38] sm:$0xff] }
  0xa4   : > { %1028 = vst [vmem:[%s1542_s17 + $0x3c0] sm:$0xff] %v772_v46  ;;  %v428_v46 = vld [vmem:[%s1526_s24 + $0x900] sm:$0xff]  ;;  %v795_v51 = vpack.c.bf16 %v427_v44, %v426_v43  ;;  %v469_v43 = vld [vmem:[%s1526_s24 + $0xa48] sm:$0xff] }
  0xa5   : > { %1029 = vst [vmem:[%s1542_s17 + $0x3c8] sm:$0xff] %v773_v49  ;;  %v430_v49 = vld [vmem:[%s1526_s24 + $0x910] sm:$0xff]  ;;  %v796_v54 = vpack.c.bf16 %v429_v47, %v428_v46  ;;  %v471_v46 = vld [vmem:[%s1526_s24 + $0xa58] sm:$0xff] }
  0xa6   : > { %1030 = vst [vmem:[%s1542_s17 + $0x3d0] sm:$0xff] %v774_v52  ;;  %v432_v52 = vld [vmem:[%s1526_s24 + $0x920] sm:$0xff]  ;;  %v797_v57 = vpack.c.bf16 %v431_v50, %v430_v49  ;;  %v473_v49 = vld [vmem:[%s1526_s24 + $0xa68] sm:$0xff] }
  0xa7   : > { %1031 = vst [vmem:[%s1542_s17 + $0x3d8] sm:$0xff] %v775_v55  ;;  %v434_v55 = vld [vmem:[%s1526_s24 + $0x930] sm:$0xff]  ;;  %v798_v60 = vpack.c.bf16 %v433_v53, %v432_v52  ;;  %v475_v52 = vld [vmem:[%s1526_s24 + $0xa78] sm:$0xff] }
  0xa8   : > { %1032 = vst [vmem:[%s1542_s17 + $0x3e0] sm:$0xff] %v776_v58  ;;  %v436_v58 = vld [vmem:[%s1526_s24 + $0x940] sm:$0xff]  ;;  %v799_v63 = vpack.c.bf16 %v435_v56, %v434_v55  ;;  %v477_v55 = vld [vmem:[%s1526_s24 + $0xa88] sm:$0xff] }
  0xa9   : > { %1033 = vst [vmem:[%s1542_s17 + $0x3e8] sm:$0xff] %v777_v61  ;;  %v438_v61 = vld [vmem:[%s1526_s24 + $0x950] sm:$0xff]  ;;  %v800_v2 = vpack.c.bf16 %v437_v59, %v436_v58  ;;  %v479_v58 = vld [vmem:[%s1526_s24 + $0xa98] sm:$0xff] }
  0xaa   : > { %1034 = vst [vmem:[%s1542_s17 + $0x3f0] sm:$0xff] %v778_v0  ;;  %v440_v0 = vld [vmem:[%s1526_s24 + $0x960] sm:$0xff]  ;;  %v801_v5 = vpack.c.bf16 %v439_v62, %v438_v61  ;;  %v481_v61 = vld [vmem:[%s1526_s24 + $0xaa8] sm:$0xff] }
  0xab   : > { %1035 = vst [vmem:[%s1542_s17 + $0x3f8] sm:$0xff] %v779_v3  ;;  %v442_v3 = vld [vmem:[%s1526_s24 + $0x970] sm:$0xff]  ;;  %v802_v8 = vpack.c.bf16 %v441_v1, %v440_v0  ;;  %v483_v0 = vld [vmem:[%s1526_s24 + $0xab8] sm:$0xff] }
  0xac   : > { %1036 = vst [vmem:[%s1542_s17 + $0x400] sm:$0xff] %v780_v6  ;;  %v444_v6 = vld [vmem:[%s1526_s24 + $0x980] sm:$0xff]  ;;  %v803_v11 = vpack.c.bf16 %v443_v4, %v442_v3  ;;  %v485_v3 = vld [vmem:[%s1526_s24 + $0xac8] sm:$0xff] }
  0xad   : > { %1037 = vst [vmem:[%s1542_s17 + $0x408] sm:$0xff] %v781_v9  ;;  %v446_v9 = vld [vmem:[%s1526_s24 + $0x990] sm:$0xff]  ;;  %v804_v14 = vpack.c.bf16 %v445_v7, %v444_v6  ;;  %v487_v6 = vld [vmem:[%s1526_s24 + $0xad8] sm:$0xff] }
  0xae   : > { %1038 = vst [vmem:[%s1542_s17 + $0x410] sm:$0xff] %v782_v12  ;;  %v448_v12 = vld [vmem:[%s1526_s24 + $0x9a0] sm:$0xff]  ;;  %v805_v17 = vpack.c.bf16 %v447_v10, %v446_v9  ;;  %v489_v9 = vld [vmem:[%s1526_s24 + $0xae8] sm:$0xff] }
  0xaf   : > { %1039 = vst [vmem:[%s1542_s17 + $0x418] sm:$0xff] %v783_v15  ;;  %v450_v15 = vld [vmem:[%s1526_s24 + $0x9b0] sm:$0xff]  ;;  %v806_v20 = vpack.c.bf16 %v449_v13, %v448_v12  ;;  %v491_v12 = vld [vmem:[%s1526_s24 + $0xaf8] sm:$0xff] }
  0xb0   : > { %1040 = vst [vmem:[%s1542_s17 + $0x420] sm:$0xff] %v784_v18  ;;  %v452_v18 = vld [vmem:[%s1526_s24 + $0x9c0] sm:$0xff]  ;;  %v807_v23 = vpack.c.bf16 %v451_v16, %v450_v15  ;;  %v493_v15 = vld [vmem:[%s1526_s24 + $0xb08] sm:$0xff] }
  0xb1   : > { %1041 = vst [vmem:[%s1542_s17 + $0x428] sm:$0xff] %v785_v21  ;;  %v454_v21 = vld [vmem:[%s1526_s24 + $0x9d0] sm:$0xff]  ;;  %v808_v26 = vpack.c.bf16 %v453_v19, %v452_v18  ;;  %v495_v18 = vld [vmem:[%s1526_s24 + $0xb18] sm:$0xff] }
  0xb2   : > { %1042 = vst [vmem:[%s1542_s17 + $0x430] sm:$0xff] %v786_v24  ;;  %v456_v24 = vld [vmem:[%s1526_s24 + $0x9e0] sm:$0xff]  ;;  %v809_v29 = vpack.c.bf16 %v455_v22, %v454_v21  ;;  %v497_v21 = vld [vmem:[%s1526_s24 + $0xb28] sm:$0xff] }
  0xb3   : > { %1043 = vst [vmem:[%s1542_s17 + $0x438] sm:$0xff] %v787_v27  ;;  %v458_v27 = vld [vmem:[%s1526_s24 + $0x9f0] sm:$0xff]  ;;  %v810_v32 = vpack.c.bf16 %v457_v25, %v456_v24  ;;  %v499_v24 = vld [vmem:[%s1526_s24 + $0xb38] sm:$0xff] }
  0xb4   : > { %1044 = vst [vmem:[%s1542_s17 + $0x440] sm:$0xff] %v788_v30  ;;  %v460_v30 = vld [vmem:[%s1526_s24 + $0xa00] sm:$0xff]  ;;  %v811_v35 = vpack.c.bf16 %v459_v28, %v458_v27  ;;  %v501_v27 = vld [vmem:[%s1526_s24 + $0xb48] sm:$0xff] }
  0xb5   : > { %1045 = vst [vmem:[%s1542_s17 + $0x448] sm:$0xff] %v789_v33  ;;  %v462_v33 = vld [vmem:[%s1526_s24 + $0xa10] sm:$0xff]  ;;  %v812_v38 = vpack.c.bf16 %v461_v31, %v460_v30  ;;  %v503_v30 = vld [vmem:[%s1526_s24 + $0xb58] sm:$0xff] }
  0xb6   : > { %1046 = vst [vmem:[%s1542_s17 + $0x450] sm:$0xff] %v790_v36  ;;  %v464_v36 = vld [vmem:[%s1526_s24 + $0xa20] sm:$0xff]  ;;  %v813_v41 = vpack.c.bf16 %v463_v34, %v462_v33  ;;  %v505_v33 = vld [vmem:[%s1526_s24 + $0xb68] sm:$0xff] }
  0xb7   : > { %1047 = vst [vmem:[%s1542_s17 + $0x458] sm:$0xff] %v791_v39  ;;  %v466_v39 = vld [vmem:[%s1526_s24 + $0xa30] sm:$0xff]  ;;  %v814_v44 = vpack.c.bf16 %v465_v37, %v464_v36  ;;  %v507_v36 = vld [vmem:[%s1526_s24 + $0xb78] sm:$0xff] }
  0xb8   : > { %1048 = vst [vmem:[%s1542_s17 + $0x460] sm:$0xff] %v792_v42  ;;  %v468_v42 = vld [vmem:[%s1526_s24 + $0xa40] sm:$0xff]  ;;  %v815_v47 = vpack.c.bf16 %v467_v40, %v466_v39  ;;  %v509_v39 = vld [vmem:[%s1526_s24 + $0xb88] sm:$0xff] }
  0xb9   : > { %1049 = vst [vmem:[%s1542_s17 + $0x468] sm:$0xff] %v793_v45  ;;  %v470_v45 = vld [vmem:[%s1526_s24 + $0xa50] sm:$0xff]  ;;  %v816_v50 = vpack.c.bf16 %v469_v43, %v468_v42  ;;  %v511_v42 = vld [vmem:[%s1526_s24 + $0xb98] sm:$0xff] }
  0xba   : > { %1050 = vst [vmem:[%s1542_s17 + $0x470] sm:$0xff] %v794_v48  ;;  %v472_v48 = vld [vmem:[%s1526_s24 + $0xa60] sm:$0xff]  ;;  %v817_v53 = vpack.c.bf16 %v471_v46, %v470_v45  ;;  %v513_v45 = vld [vmem:[%s1526_s24 + $0xba8] sm:$0xff] }
  0xbb   : > { %1051 = vst [vmem:[%s1542_s17 + $0x478] sm:$0xff] %v795_v51  ;;  %v474_v51 = vld [vmem:[%s1526_s24 + $0xa70] sm:$0xff]  ;;  %v818_v56 = vpack.c.bf16 %v473_v49, %v472_v48  ;;  %v515_v48 = vld [vmem:[%s1526_s24 + $0xbb8] sm:$0xff] }
  0xbc   : > { %1052 = vst [vmem:[%s1542_s17 + $0x480] sm:$0xff] %v796_v54  ;;  %v476_v54 = vld [vmem:[%s1526_s24 + $0xa80] sm:$0xff]  ;;  %v819_v59 = vpack.c.bf16 %v475_v52, %v474_v51  ;;  %v517_v51 = vld [vmem:[%s1526_s24 + $0xbc8] sm:$0xff] }
  0xbd   : > { %1053 = vst [vmem:[%s1542_s17 + $0x488] sm:$0xff] %v797_v57  ;;  %v478_v57 = vld [vmem:[%s1526_s24 + $0xa90] sm:$0xff]  ;;  %v820_v62 = vpack.c.bf16 %v477_v55, %v476_v54  ;;  %v519_v54 = vld [vmem:[%s1526_s24 + $0xbd8] sm:$0xff] }
  0xbe   : > { %1054 = vst [vmem:[%s1542_s17 + $0x490] sm:$0xff] %v798_v60  ;;  %v480_v60 = vld [vmem:[%s1526_s24 + $0xaa0] sm:$0xff]  ;;  %v821_v1 = vpack.c.bf16 %v479_v58, %v478_v57  ;;  %v521_v57 = vld [vmem:[%s1526_s24 + $0xbe8] sm:$0xff] }
  0xbf   : > { %1055 = vst [vmem:[%s1542_s17 + $0x498] sm:$0xff] %v799_v63  ;;  %v482_v63 = vld [vmem:[%s1526_s24 + $0xab0] sm:$0xff]  ;;  %v822_v4 = vpack.c.bf16 %v481_v61, %v480_v60  ;;  %v523_v60 = vld [vmem:[%s1526_s24 + $0xbf8] sm:$0xff] }
  0xc0   : > { %1056 = vst [vmem:[%s1542_s17 + $0x4a0] sm:$0xff] %v800_v2  ;;  %v484_v2 = vld [vmem:[%s1526_s24 + $0xac0] sm:$0xff]  ;;  %v823_v7 = vpack.c.bf16 %v483_v0, %v482_v63  ;;  %v525_v63 = vld [vmem:[%s1526_s24 + $0xc08] sm:$0xff] }
  0xc1   : > { %1057 = vst [vmem:[%s1542_s17 + $0x4a8] sm:$0xff] %v801_v5  ;;  %v486_v5 = vld [vmem:[%s1526_s24 + $0xad0] sm:$0xff]  ;;  %v824_v10 = vpack.c.bf16 %v485_v3, %v484_v2  ;;  %v527_v2 = vld [vmem:[%s1526_s24 + $0xc18] sm:$0xff] }
  0xc2   : > { %1058 = vst [vmem:[%s1542_s17 + $0x4b0] sm:$0xff] %v802_v8  ;;  %v488_v8 = vld [vmem:[%s1526_s24 + $0xae0] sm:$0xff]  ;;  %v825_v13 = vpack.c.bf16 %v487_v6, %v486_v5  ;;  %v529_v5 = vld [vmem:[%s1526_s24 + $0xc28] sm:$0xff] }
  0xc3   : > { %1059 = vst [vmem:[%s1542_s17 + $0x4b8] sm:$0xff] %v803_v11  ;;  %v490_v11 = vld [vmem:[%s1526_s24 + $0xaf0] sm:$0xff]  ;;  %v826_v16 = vpack.c.bf16 %v489_v9, %v488_v8  ;;  %v531_v8 = vld [vmem:[%s1526_s24 + $0xc38] sm:$0xff] }
  0xc4   : > { %1060 = vst [vmem:[%s1542_s17 + $0x4c0] sm:$0xff] %v804_v14  ;;  %v492_v14 = vld [vmem:[%s1526_s24 + $0xb00] sm:$0xff]  ;;  %v827_v19 = vpack.c.bf16 %v491_v12, %v490_v11  ;;  %v533_v11 = vld [vmem:[%s1526_s24 + $0xc48] sm:$0xff] }
  0xc5   : > { %1061 = vst [vmem:[%s1542_s17 + $0x4c8] sm:$0xff] %v805_v17  ;;  %v494_v17 = vld [vmem:[%s1526_s24 + $0xb10] sm:$0xff]  ;;  %v828_v22 = vpack.c.bf16 %v493_v15, %v492_v14  ;;  %v535_v14 = vld [vmem:[%s1526_s24 + $0xc58] sm:$0xff] }
  0xc6   : > { %1062 = vst [vmem:[%s1542_s17 + $0x4d0] sm:$0xff] %v806_v20  ;;  %v496_v20 = vld [vmem:[%s1526_s24 + $0xb20] sm:$0xff]  ;;  %v829_v25 = vpack.c.bf16 %v495_v18, %v494_v17  ;;  %v537_v17 = vld [vmem:[%s1526_s24 + $0xc68] sm:$0xff] }
  0xc7   : > { %1063 = vst [vmem:[%s1542_s17 + $0x4d8] sm:$0xff] %v807_v23  ;;  %v498_v23 = vld [vmem:[%s1526_s24 + $0xb30] sm:$0xff]  ;;  %v830_v28 = vpack.c.bf16 %v497_v21, %v496_v20  ;;  %v539_v20 = vld [vmem:[%s1526_s24 + $0xc78] sm:$0xff] }
  0xc8   : > { %1064 = vst [vmem:[%s1542_s17 + $0x4e0] sm:$0xff] %v808_v26  ;;  %v500_v26 = vld [vmem:[%s1526_s24 + $0xb40] sm:$0xff]  ;;  %v831_v31 = vpack.c.bf16 %v499_v24, %v498_v23  ;;  %v541_v23 = vld [vmem:[%s1526_s24 + $0xc88] sm:$0xff] }
  0xc9   : > { %1065 = vst [vmem:[%s1542_s17 + $0x4e8] sm:$0xff] %v809_v29  ;;  %v502_v29 = vld [vmem:[%s1526_s24 + $0xb50] sm:$0xff]  ;;  %v832_v34 = vpack.c.bf16 %v501_v27, %v500_v26  ;;  %v543_v26 = vld [vmem:[%s1526_s24 + $0xc98] sm:$0xff] }
  0xca   : > { %1066 = vst [vmem:[%s1542_s17 + $0x4f0] sm:$0xff] %v810_v32  ;;  %v504_v32 = vld [vmem:[%s1526_s24 + $0xb60] sm:$0xff]  ;;  %v833_v37 = vpack.c.bf16 %v503_v30, %v502_v29  ;;  %v545_v29 = vld [vmem:[%s1526_s24 + $0xca8] sm:$0xff] }
  0xcb   : > { %1067 = vst [vmem:[%s1542_s17 + $0x4f8] sm:$0xff] %v811_v35  ;;  %v506_v35 = vld [vmem:[%s1526_s24 + $0xb70] sm:$0xff]  ;;  %v834_v40 = vpack.c.bf16 %v505_v33, %v504_v32  ;;  %v547_v32 = vld [vmem:[%s1526_s24 + $0xcb8] sm:$0xff] }
  0xcc   : > { %1068 = vst [vmem:[%s1542_s17 + $0x500] sm:$0xff] %v812_v38  ;;  %v508_v38 = vld [vmem:[%s1526_s24 + $0xb80] sm:$0xff]  ;;  %v835_v43 = vpack.c.bf16 %v507_v36, %v506_v35  ;;  %v549_v35 = vld [vmem:[%s1526_s24 + $0xcc8] sm:$0xff] }
  0xcd   : > { %1069 = vst [vmem:[%s1542_s17 + $0x508] sm:$0xff] %v813_v41  ;;  %v510_v41 = vld [vmem:[%s1526_s24 + $0xb90] sm:$0xff]  ;;  %v836_v46 = vpack.c.bf16 %v509_v39, %v508_v38  ;;  %v551_v38 = vld [vmem:[%s1526_s24 + $0xcd8] sm:$0xff] }
  0xce   : > { %1070 = vst [vmem:[%s1542_s17 + $0x510] sm:$0xff] %v814_v44  ;;  %v512_v44 = vld [vmem:[%s1526_s24 + $0xba0] sm:$0xff]  ;;  %v837_v49 = vpack.c.bf16 %v511_v42, %v510_v41  ;;  %v553_v41 = vld [vmem:[%s1526_s24 + $0xce8] sm:$0xff] }
  0xcf   : > { %1071 = vst [vmem:[%s1542_s17 + $0x518] sm:$0xff] %v815_v47  ;;  %v514_v47 = vld [vmem:[%s1526_s24 + $0xbb0] sm:$0xff]  ;;  %v838_v52 = vpack.c.bf16 %v513_v45, %v512_v44  ;;  %v555_v44 = vld [vmem:[%s1526_s24 + $0xcf8] sm:$0xff] }
  0xd0   : > { %1072 = vst [vmem:[%s1542_s17 + $0x520] sm:$0xff] %v816_v50  ;;  %v516_v50 = vld [vmem:[%s1526_s24 + $0xbc0] sm:$0xff]  ;;  %v839_v55 = vpack.c.bf16 %v515_v48, %v514_v47  ;;  %v557_v47 = vld [vmem:[%s1526_s24 + $0xd08] sm:$0xff] }
  0xd1   : > { %1073 = vst [vmem:[%s1542_s17 + $0x528] sm:$0xff] %v817_v53  ;;  %v518_v53 = vld [vmem:[%s1526_s24 + $0xbd0] sm:$0xff]  ;;  %v840_v58 = vpack.c.bf16 %v517_v51, %v516_v50  ;;  %v559_v50 = vld [vmem:[%s1526_s24 + $0xd18] sm:$0xff] }
  0xd2   : > { %1074 = vst [vmem:[%s1542_s17 + $0x530] sm:$0xff] %v818_v56  ;;  %v520_v56 = vld [vmem:[%s1526_s24 + $0xbe0] sm:$0xff]  ;;  %v841_v61 = vpack.c.bf16 %v519_v54, %v518_v53  ;;  %v561_v53 = vld [vmem:[%s1526_s24 + $0xd28] sm:$0xff] }
  0xd3   : > { %1075 = vst [vmem:[%s1542_s17 + $0x538] sm:$0xff] %v819_v59  ;;  %v522_v59 = vld [vmem:[%s1526_s24 + $0xbf0] sm:$0xff]  ;;  %v842_v0 = vpack.c.bf16 %v521_v57, %v520_v56  ;;  %v563_v56 = vld [vmem:[%s1526_s24 + $0xd38] sm:$0xff] }
  0xd4   : > { %1076 = vst [vmem:[%s1542_s17 + $0x540] sm:$0xff] %v820_v62  ;;  %v524_v62 = vld [vmem:[%s1526_s24 + $0xc00] sm:$0xff]  ;;  %v843_v3 = vpack.c.bf16 %v523_v60, %v522_v59  ;;  %v565_v59 = vld [vmem:[%s1526_s24 + $0xd48] sm:$0xff] }
  0xd5   : > { %1077 = vst [vmem:[%s1542_s17 + $0x548] sm:$0xff] %v821_v1  ;;  %v526_v1 = vld [vmem:[%s1526_s24 + $0xc10] sm:$0xff]  ;;  %v844_v6 = vpack.c.bf16 %v525_v63, %v524_v62  ;;  %v567_v62 = vld [vmem:[%s1526_s24 + $0xd58] sm:$0xff] }
  0xd6   : > { %1078 = vst [vmem:[%s1542_s17 + $0x550] sm:$0xff] %v822_v4  ;;  %v528_v4 = vld [vmem:[%s1526_s24 + $0xc20] sm:$0xff]  ;;  %v845_v9 = vpack.c.bf16 %v527_v2, %v526_v1  ;;  %v569_v1 = vld [vmem:[%s1526_s24 + $0xd68] sm:$0xff] }
  0xd7   : > { %1079 = vst [vmem:[%s1542_s17 + $0x558] sm:$0xff] %v823_v7  ;;  %v530_v7 = vld [vmem:[%s1526_s24 + $0xc30] sm:$0xff]  ;;  %v846_v12 = vpack.c.bf16 %v529_v5, %v528_v4  ;;  %v571_v4 = vld [vmem:[%s1526_s24 + $0xd78] sm:$0xff] }
  0xd8   : > { %1080 = vst [vmem:[%s1542_s17 + $0x560] sm:$0xff] %v824_v10  ;;  %v532_v10 = vld [vmem:[%s1526_s24 + $0xc40] sm:$0xff]  ;;  %v847_v15 = vpack.c.bf16 %v531_v8, %v530_v7  ;;  %v573_v7 = vld [vmem:[%s1526_s24 + $0xd88] sm:$0xff] }
  0xd9   : > { %1081 = vst [vmem:[%s1542_s17 + $0x568] sm:$0xff] %v825_v13  ;;  %v534_v13 = vld [vmem:[%s1526_s24 + $0xc50] sm:$0xff]  ;;  %v848_v18 = vpack.c.bf16 %v533_v11, %v532_v10  ;;  %v575_v10 = vld [vmem:[%s1526_s24 + $0xd98] sm:$0xff] }
  0xda   : > { %1082 = vst [vmem:[%s1542_s17 + $0x570] sm:$0xff] %v826_v16  ;;  %v536_v16 = vld [vmem:[%s1526_s24 + $0xc60] sm:$0xff]  ;;  %v849_v21 = vpack.c.bf16 %v535_v14, %v534_v13  ;;  %v577_v13 = vld [vmem:[%s1526_s24 + $0xda8] sm:$0xff] }
  0xdb   : > { %1083 = vst [vmem:[%s1542_s17 + $0x578] sm:$0xff] %v827_v19  ;;  %v538_v19 = vld [vmem:[%s1526_s24 + $0xc70] sm:$0xff]  ;;  %v850_v24 = vpack.c.bf16 %v537_v17, %v536_v16  ;;  %v579_v16 = vld [vmem:[%s1526_s24 + $0xdb8] sm:$0xff] }
  0xdc   : > { %1084 = vst [vmem:[%s1542_s17 + $0x580] sm:$0xff] %v828_v22  ;;  %v540_v22 = vld [vmem:[%s1526_s24 + $0xc80] sm:$0xff]  ;;  %v851_v27 = vpack.c.bf16 %v539_v20, %v538_v19  ;;  %v581_v19 = vld [vmem:[%s1526_s24 + $0xdc8] sm:$0xff] }
  0xdd   : > { %1085 = vst [vmem:[%s1542_s17 + $0x588] sm:$0xff] %v829_v25  ;;  %v542_v25 = vld [vmem:[%s1526_s24 + $0xc90] sm:$0xff]  ;;  %v852_v30 = vpack.c.bf16 %v541_v23, %v540_v22  ;;  %v583_v22 = vld [vmem:[%s1526_s24 + $0xdd8] sm:$0xff] }
  0xde   : > { %1086 = vst [vmem:[%s1542_s17 + $0x590] sm:$0xff] %v830_v28  ;;  %v544_v28 = vld [vmem:[%s1526_s24 + $0xca0] sm:$0xff]  ;;  %v853_v33 = vpack.c.bf16 %v543_v26, %v542_v25  ;;  %v585_v25 = vld [vmem:[%s1526_s24 + $0xde8] sm:$0xff] }
  0xdf   : > { %1087 = vst [vmem:[%s1542_s17 + $0x598] sm:$0xff] %v831_v31  ;;  %v546_v31 = vld [vmem:[%s1526_s24 + $0xcb0] sm:$0xff]  ;;  %v854_v36 = vpack.c.bf16 %v545_v29, %v544_v28  ;;  %v587_v28 = vld [vmem:[%s1526_s24 + $0xdf8] sm:$0xff] }
  0xe0   : > { %1088 = vst [vmem:[%s1542_s17 + $0x5a0] sm:$0xff] %v832_v34  ;;  %v548_v34 = vld [vmem:[%s1526_s24 + $0xcc0] sm:$0xff]  ;;  %v855_v39 = vpack.c.bf16 %v547_v32, %v546_v31  ;;  %v589_v31 = vld [vmem:[%s1526_s24 + $0xe08] sm:$0xff] }
  0xe1   : > { %1089 = vst [vmem:[%s1542_s17 + $0x5a8] sm:$0xff] %v833_v37  ;;  %v550_v37 = vld [vmem:[%s1526_s24 + $0xcd0] sm:$0xff]  ;;  %v856_v42 = vpack.c.bf16 %v549_v35, %v548_v34  ;;  %v591_v34 = vld [vmem:[%s1526_s24 + $0xe18] sm:$0xff] }
  0xe2   : > { %1090 = vst [vmem:[%s1542_s17 + $0x5b0] sm:$0xff] %v834_v40  ;;  %v552_v40 = vld [vmem:[%s1526_s24 + $0xce0] sm:$0xff]  ;;  %v857_v45 = vpack.c.bf16 %v551_v38, %v550_v37  ;;  %v593_v37 = vld [vmem:[%s1526_s24 + $0xe28] sm:$0xff] }
  0xe3   : > { %1091 = vst [vmem:[%s1542_s17 + $0x5b8] sm:$0xff] %v835_v43  ;;  %v554_v43 = vld [vmem:[%s1526_s24 + $0xcf0] sm:$0xff]  ;;  %v858_v48 = vpack.c.bf16 %v553_v41, %v552_v40  ;;  %v595_v40 = vld [vmem:[%s1526_s24 + $0xe38] sm:$0xff] }
  0xe4   : > { %1092 = vst [vmem:[%s1542_s17 + $0x5c0] sm:$0xff] %v836_v46  ;;  %v556_v46 = vld [vmem:[%s1526_s24 + $0xd00] sm:$0xff]  ;;  %v859_v51 = vpack.c.bf16 %v555_v44, %v554_v43  ;;  %v597_v43 = vld [vmem:[%s1526_s24 + $0xe48] sm:$0xff] }
  0xe5   : > { %1093 = vst [vmem:[%s1542_s17 + $0x5c8] sm:$0xff] %v837_v49  ;;  %v558_v49 = vld [vmem:[%s1526_s24 + $0xd10] sm:$0xff]  ;;  %v860_v54 = vpack.c.bf16 %v557_v47, %v556_v46  ;;  %v599_v46 = vld [vmem:[%s1526_s24 + $0xe58] sm:$0xff] }
  0xe6   : > { %1094 = vst [vmem:[%s1542_s17 + $0x5d0] sm:$0xff] %v838_v52  ;;  %v560_v52 = vld [vmem:[%s1526_s24 + $0xd20] sm:$0xff]  ;;  %v861_v57 = vpack.c.bf16 %v559_v50, %v558_v49  ;;  %v601_v49 = vld [vmem:[%s1526_s24 + $0xe68] sm:$0xff] }
  0xe7   : > { %1095 = vst [vmem:[%s1542_s17 + $0x5d8] sm:$0xff] %v839_v55  ;;  %v562_v55 = vld [vmem:[%s1526_s24 + $0xd30] sm:$0xff]  ;;  %v862_v60 = vpack.c.bf16 %v561_v53, %v560_v52  ;;  %v603_v52 = vld [vmem:[%s1526_s24 + $0xe78] sm:$0xff] }
  0xe8   : > { %1096 = vst [vmem:[%s1542_s17 + $0x5e0] sm:$0xff] %v840_v58  ;;  %v564_v58 = vld [vmem:[%s1526_s24 + $0xd40] sm:$0xff]  ;;  %v863_v63 = vpack.c.bf16 %v563_v56, %v562_v55  ;;  %v605_v55 = vld [vmem:[%s1526_s24 + $0xe88] sm:$0xff] }
  0xe9   : > { %1097 = vst [vmem:[%s1542_s17 + $0x5e8] sm:$0xff] %v841_v61  ;;  %v566_v61 = vld [vmem:[%s1526_s24 + $0xd50] sm:$0xff]  ;;  %v864_v2 = vpack.c.bf16 %v565_v59, %v564_v58  ;;  %v607_v58 = vld [vmem:[%s1526_s24 + $0xe98] sm:$0xff] }
  0xea   : > { %1098 = vst [vmem:[%s1542_s17 + $0x5f0] sm:$0xff] %v842_v0  ;;  %v568_v0 = vld [vmem:[%s1526_s24 + $0xd60] sm:$0xff]  ;;  %v865_v5 = vpack.c.bf16 %v567_v62, %v566_v61  ;;  %v609_v61 = vld [vmem:[%s1526_s24 + $0xea8] sm:$0xff] }
  0xeb   : > { %1099 = vst [vmem:[%s1542_s17 + $0x5f8] sm:$0xff] %v843_v3  ;;  %v570_v3 = vld [vmem:[%s1526_s24 + $0xd70] sm:$0xff]  ;;  %v866_v8 = vpack.c.bf16 %v569_v1, %v568_v0  ;;  %v611_v0 = vld [vmem:[%s1526_s24 + $0xeb8] sm:$0xff] }
  0xec   : > { %1100 = vst [vmem:[%s1542_s17 + $0x600] sm:$0xff] %v844_v6  ;;  %v572_v6 = vld [vmem:[%s1526_s24 + $0xd80] sm:$0xff]  ;;  %v867_v11 = vpack.c.bf16 %v571_v4, %v570_v3  ;;  %v613_v3 = vld [vmem:[%s1526_s24 + $0xec8] sm:$0xff] }
  0xed   : > { %1101 = vst [vmem:[%s1542_s17 + $0x608] sm:$0xff] %v845_v9  ;;  %v574_v9 = vld [vmem:[%s1526_s24 + $0xd90] sm:$0xff]  ;;  %v868_v14 = vpack.c.bf16 %v573_v7, %v572_v6  ;;  %v615_v6 = vld [vmem:[%s1526_s24 + $0xed8] sm:$0xff] }
  0xee   : > { %1102 = vst [vmem:[%s1542_s17 + $0x610] sm:$0xff] %v846_v12  ;;  %v576_v12 = vld [vmem:[%s1526_s24 + $0xda0] sm:$0xff]  ;;  %v869_v17 = vpack.c.bf16 %v575_v10, %v574_v9  ;;  %v617_v9 = vld [vmem:[%s1526_s24 + $0xee8] sm:$0xff] }
  0xef   : > { %1103 = vst [vmem:[%s1542_s17 + $0x618] sm:$0xff] %v847_v15  ;;  %v578_v15 = vld [vmem:[%s1526_s24 + $0xdb0] sm:$0xff]  ;;  %v870_v20 = vpack.c.bf16 %v577_v13, %v576_v12  ;;  %v619_v12 = vld [vmem:[%s1526_s24 + $0xef8] sm:$0xff] }
  0xf0   : > { %1104 = vst [vmem:[%s1542_s17 + $0x620] sm:$0xff] %v848_v18  ;;  %v580_v18 = vld [vmem:[%s1526_s24 + $0xdc0] sm:$0xff]  ;;  %v871_v23 = vpack.c.bf16 %v579_v16, %v578_v15  ;;  %v621_v15 = vld [vmem:[%s1526_s24 + $0xf08] sm:$0xff] }
  0xf1   : > { %1105 = vst [vmem:[%s1542_s17 + $0x628] sm:$0xff] %v849_v21  ;;  %v582_v21 = vld [vmem:[%s1526_s24 + $0xdd0] sm:$0xff]  ;;  %v872_v26 = vpack.c.bf16 %v581_v19, %v580_v18  ;;  %v623_v18 = vld [vmem:[%s1526_s24 + $0xf18] sm:$0xff] }
  0xf2   : > { %1106 = vst [vmem:[%s1542_s17 + $0x630] sm:$0xff] %v850_v24  ;;  %v584_v24 = vld [vmem:[%s1526_s24 + $0xde0] sm:$0xff]  ;;  %v873_v29 = vpack.c.bf16 %v583_v22, %v582_v21  ;;  %v625_v21 = vld [vmem:[%s1526_s24 + $0xf28] sm:$0xff] }
  0xf3   : > { %1107 = vst [vmem:[%s1542_s17 + $0x638] sm:$0xff] %v851_v27  ;;  %v586_v27 = vld [vmem:[%s1526_s24 + $0xdf0] sm:$0xff]  ;;  %v874_v32 = vpack.c.bf16 %v585_v25, %v584_v24  ;;  %v627_v24 = vld [vmem:[%s1526_s24 + $0xf38] sm:$0xff] }
  0xf4   : > { %1108 = vst [vmem:[%s1542_s17 + $0x640] sm:$0xff] %v852_v30  ;;  %v588_v30 = vld [vmem:[%s1526_s24 + $0xe00] sm:$0xff]  ;;  %v875_v35 = vpack.c.bf16 %v587_v28, %v586_v27  ;;  %v629_v27 = vld [vmem:[%s1526_s24 + $0xf48] sm:$0xff] }
  0xf5   : > { %1109 = vst [vmem:[%s1542_s17 + $0x648] sm:$0xff] %v853_v33  ;;  %v590_v33 = vld [vmem:[%s1526_s24 + $0xe10] sm:$0xff]  ;;  %v876_v38 = vpack.c.bf16 %v589_v31, %v588_v30  ;;  %v631_v30 = vld [vmem:[%s1526_s24 + $0xf58] sm:$0xff] }
  0xf6   : > { %1110 = vst [vmem:[%s1542_s17 + $0x650] sm:$0xff] %v854_v36  ;;  %v592_v36 = vld [vmem:[%s1526_s24 + $0xe20] sm:$0xff]  ;;  %v877_v41 = vpack.c.bf16 %v591_v34, %v590_v33  ;;  %v633_v33 = vld [vmem:[%s1526_s24 + $0xf68] sm:$0xff] }
  0xf7   : > { %1111 = vst [vmem:[%s1542_s17 + $0x658] sm:$0xff] %v855_v39  ;;  %v594_v39 = vld [vmem:[%s1526_s24 + $0xe30] sm:$0xff]  ;;  %v878_v44 = vpack.c.bf16 %v593_v37, %v592_v36  ;;  %v635_v36 = vld [vmem:[%s1526_s24 + $0xf78] sm:$0xff] }
  0xf8   : > { %1112 = vst [vmem:[%s1542_s17 + $0x660] sm:$0xff] %v856_v42  ;;  %v596_v42 = vld [vmem:[%s1526_s24 + $0xe40] sm:$0xff]  ;;  %v879_v47 = vpack.c.bf16 %v595_v40, %v594_v39  ;;  %v637_v39 = vld [vmem:[%s1526_s24 + $0xf88] sm:$0xff] }
  0xf9   : > { %1113 = vst [vmem:[%s1542_s17 + $0x668] sm:$0xff] %v857_v45  ;;  %v598_v45 = vld [vmem:[%s1526_s24 + $0xe50] sm:$0xff]  ;;  %v880_v50 = vpack.c.bf16 %v597_v43, %v596_v42  ;;  %v639_v42 = vld [vmem:[%s1526_s24 + $0xf98] sm:$0xff] }
  0xfa   : > { %1114 = vst [vmem:[%s1542_s17 + $0x670] sm:$0xff] %v858_v48  ;;  %v600_v48 = vld [vmem:[%s1526_s24 + $0xe60] sm:$0xff]  ;;  %v881_v53 = vpack.c.bf16 %v599_v46, %v598_v45  ;;  %v641_v45 = vld [vmem:[%s1526_s24 + $0xfa8] sm:$0xff] }
  0xfb   : > { %1115 = vst [vmem:[%s1542_s17 + $0x678] sm:$0xff] %v859_v51  ;;  %v602_v51 = vld [vmem:[%s1526_s24 + $0xe70] sm:$0xff]  ;;  %v882_v56 = vpack.c.bf16 %v601_v49, %v600_v48  ;;  %v643_v48 = vld [vmem:[%s1526_s24 + $0xfb8] sm:$0xff] }
  0xfc   : > { %1116 = vst [vmem:[%s1542_s17 + $0x680] sm:$0xff] %v860_v54  ;;  %v604_v54 = vld [vmem:[%s1526_s24 + $0xe80] sm:$0xff]  ;;  %v883_v59 = vpack.c.bf16 %v603_v52, %v602_v51  ;;  %v645_v51 = vld [vmem:[%s1526_s24 + $0xfc8] sm:$0xff] }
  0xfd   : > { %1117 = vst [vmem:[%s1542_s17 + $0x688] sm:$0xff] %v861_v57  ;;  %v606_v57 = vld [vmem:[%s1526_s24 + $0xe90] sm:$0xff]  ;;  %v884_v62 = vpack.c.bf16 %v605_v55, %v604_v54  ;;  %v647_v54 = vld [vmem:[%s1526_s24 + $0xfd8] sm:$0xff] }
  0xfe   : > { %1118 = vst [vmem:[%s1542_s17 + $0x690] sm:$0xff] %v862_v60  ;;  %v608_v60 = vld [vmem:[%s1526_s24 + $0xea0] sm:$0xff]  ;;  %v885_v1 = vpack.c.bf16 %v607_v58, %v606_v57  ;;  %v649_v57 = vld [vmem:[%s1526_s24 + $0xfe8] sm:$0xff] }
  0xff   : > { %1119 = vst [vmem:[%s1542_s17 + $0x698] sm:$0xff] %v863_v63  ;;  %v610_v63 = vld [vmem:[%s1526_s24 + $0xeb0] sm:$0xff]  ;;  %v886_v4 = vpack.c.bf16 %v609_v61, %v608_v60  ;;  %v651_v60 = vld [vmem:[%s1526_s24 + $0xff8] sm:$0xff] }
 0x100   : > { %1120 = vst [vmem:[%s1542_s17 + $0x6a0] sm:$0xff] %v864_v2  ;;  %v612_v2 = vld [vmem:[%s1526_s24 + $0xec0] sm:$0xff]  ;;  %v887_v7 = vpack.c.bf16 %v611_v0, %v610_v63 }
 0x101   : > { %1121 = vst [vmem:[%s1542_s17 + $0x6a8] sm:$0xff] %v865_v5  ;;  %v614_v5 = vld [vmem:[%s1526_s24 + $0xed0] sm:$0xff]  ;;  %v888_v10 = vpack.c.bf16 %v613_v3, %v612_v2 }
 0x102   : > { %1122 = vst [vmem:[%s1542_s17 + $0x6b0] sm:$0xff] %v866_v8  ;;  %v616_v8 = vld [vmem:[%s1526_s24 + $0xee0] sm:$0xff]  ;;  %v889_v13 = vpack.c.bf16 %v615_v6, %v614_v5 }
 0x103   : > { %1123 = vst [vmem:[%s1542_s17 + $0x6b8] sm:$0xff] %v867_v11  ;;  %v618_v11 = vld [vmem:[%s1526_s24 + $0xef0] sm:$0xff]  ;;  %v890_v16 = vpack.c.bf16 %v617_v9, %v616_v8 }
 0x104   : > { %1124 = vst [vmem:[%s1542_s17 + $0x6c0] sm:$0xff] %v868_v14  ;;  %v620_v14 = vld [vmem:[%s1526_s24 + $0xf00] sm:$0xff]  ;;  %v891_v19 = vpack.c.bf16 %v619_v12, %v618_v11 }
 0x105   : > { %1125 = vst [vmem:[%s1542_s17 + $0x6c8] sm:$0xff] %v869_v17  ;;  %v622_v17 = vld [vmem:[%s1526_s24 + $0xf10] sm:$0xff]  ;;  %v892_v22 = vpack.c.bf16 %v621_v15, %v620_v14 }
 0x106   : > { %1126 = vst [vmem:[%s1542_s17 + $0x6d0] sm:$0xff] %v870_v20  ;;  %v624_v20 = vld [vmem:[%s1526_s24 + $0xf20] sm:$0xff]  ;;  %v893_v25 = vpack.c.bf16 %v623_v18, %v622_v17 }
 0x107   : > { %1127 = vst [vmem:[%s1542_s17 + $0x6d8] sm:$0xff] %v871_v23  ;;  %v626_v23 = vld [vmem:[%s1526_s24 + $0xf30] sm:$0xff]  ;;  %v894_v28 = vpack.c.bf16 %v625_v21, %v624_v20 }
 0x108   : > { %1128 = vst [vmem:[%s1542_s17 + $0x6e0] sm:$0xff] %v872_v26  ;;  %v628_v26 = vld [vmem:[%s1526_s24 + $0xf40] sm:$0xff]  ;;  %v895_v31 = vpack.c.bf16 %v627_v24, %v626_v23 }
 0x109   : > { %1129 = vst [vmem:[%s1542_s17 + $0x6e8] sm:$0xff] %v873_v29  ;;  %v630_v29 = vld [vmem:[%s1526_s24 + $0xf50] sm:$0xff]  ;;  %v896_v34 = vpack.c.bf16 %v629_v27, %v628_v26 }
 0x10a   : > { %1130 = vst [vmem:[%s1542_s17 + $0x6f0] sm:$0xff] %v874_v32  ;;  %v632_v32 = vld [vmem:[%s1526_s24 + $0xf60] sm:$0xff]  ;;  %v897_v37 = vpack.c.bf16 %v631_v30, %v630_v29 }
 0x10b   : > { %1131 = vst [vmem:[%s1542_s17 + $0x6f8] sm:$0xff] %v875_v35  ;;  %v634_v35 = vld [vmem:[%s1526_s24 + $0xf70] sm:$0xff]  ;;  %v898_v40 = vpack.c.bf16 %v633_v33, %v632_v32 }
 0x10c   : > { %1132 = vst [vmem:[%s1542_s17 + $0x700] sm:$0xff] %v876_v38  ;;  %v636_v38 = vld [vmem:[%s1526_s24 + $0xf80] sm:$0xff]  ;;  %v899_v43 = vpack.c.bf16 %v635_v36, %v634_v35 }
 0x10d   : > { %1133 = vst [vmem:[%s1542_s17 + $0x708] sm:$0xff] %v877_v41  ;;  %v638_v41 = vld [vmem:[%s1526_s24 + $0xf90] sm:$0xff]  ;;  %v900_v46 = vpack.c.bf16 %v637_v39, %v636_v38 }
 0x10e   : > { %1134 = vst [vmem:[%s1542_s17 + $0x710] sm:$0xff] %v878_v44  ;;  %v640_v44 = vld [vmem:[%s1526_s24 + $0xfa0] sm:$0xff]  ;;  %v901_v49 = vpack.c.bf16 %v639_v42, %v638_v41 }
 0x10f   : > { %1135 = vst [vmem:[%s1542_s17 + $0x718] sm:$0xff] %v879_v47  ;;  %v642_v47 = vld [vmem:[%s1526_s24 + $0xfb0] sm:$0xff]  ;;  %v902_v52 = vpack.c.bf16 %v641_v45, %v640_v44 }
 0x110   : > { %1136 = vst [vmem:[%s1542_s17 + $0x720] sm:$0xff] %v880_v50  ;;  %v644_v50 = vld [vmem:[%s1526_s24 + $0xfc0] sm:$0xff]  ;;  %v903_v55 = vpack.c.bf16 %v643_v48, %v642_v47 }
 0x111   : > { %1137 = vst [vmem:[%s1542_s17 + $0x728] sm:$0xff] %v881_v53  ;;  %v646_v53 = vld [vmem:[%s1526_s24 + $0xfd0] sm:$0xff]  ;;  %v904_v58 = vpack.c.bf16 %v645_v51, %v644_v50 }
 0x112   : > { %1138 = vst [vmem:[%s1542_s17 + $0x730] sm:$0xff] %v882_v56  ;;  %v648_v56 = vld [vmem:[%s1526_s24 + $0xfe0] sm:$0xff]  ;;  %v905_v61 = vpack.c.bf16 %v647_v54, %v646_v53 }
 0x113   : > { %1139 = vst [vmem:[%s1542_s17 + $0x738] sm:$0xff] %v883_v59  ;;  %v650_v59 = vld [vmem:[%s1526_s24 + $0xff0] sm:$0xff] }
 0x114   : > { %1140 = vst [vmem:[%s1542_s17 + $0x740] sm:$0xff] %v884_v62  ;;  %v906_v62 = vpack.c.bf16 %v649_v57, %v648_v56  ;;  %v907_v63 = vpack.c.bf16 %v651_v60, %v650_v59 }
 0x115   : > { %1141 = vst [vmem:[%s1542_s17 + $0x748] sm:$0xff] %v885_v1 }
 0x116   : > { %1142 = vst [vmem:[%s1542_s17 + $0x750] sm:$0xff] %v886_v4 }
 0x117   : > { %1143 = vst [vmem:[%s1542_s17 + $0x758] sm:$0xff] %v887_v7 }
 0x118   : > { %1144 = vst [vmem:[%s1542_s17 + $0x760] sm:$0xff] %v888_v10 }
 0x119   : > { %1145 = vst [vmem:[%s1542_s17 + $0x768] sm:$0xff] %v889_v13 }
 0x11a   : > { %1146 = vst [vmem:[%s1542_s17 + $0x770] sm:$0xff] %v890_v16 }
 0x11b   : > { %1147 = vst [vmem:[%s1542_s17 + $0x778] sm:$0xff] %v891_v19 }
 0x11c   : > { %1148 = vst [vmem:[%s1542_s17 + $0x780] sm:$0xff] %v892_v22 }
 0x11d   : > { %1149 = vst [vmem:[%s1542_s17 + $0x788] sm:$0xff] %v893_v25 }
 0x11e   : > { %1150 = vst [vmem:[%s1542_s17 + $0x790] sm:$0xff] %v894_v28 }
 0x11f   : > { %1151 = vst [vmem:[%s1542_s17 + $0x798] sm:$0xff] %v895_v31 }
 0x120   : > { %1152 = vst [vmem:[%s1542_s17 + $0x7a0] sm:$0xff] %v896_v34 }
 0x121   : > { %1153 = vst [vmem:[%s1542_s17 + $0x7a8] sm:$0xff] %v897_v37 }
 0x122   : > { %1154 = vst [vmem:[%s1542_s17 + $0x7b0] sm:$0xff] %v898_v40 }
 0x123   : > { %1155 = vst [vmem:[%s1542_s17 + $0x7b8] sm:$0xff] %v899_v43 }
 0x124   : > { %1156 = vst [vmem:[%s1542_s17 + $0x7c0] sm:$0xff] %v900_v46 }
 0x125   : > { %1157 = vst [vmem:[%s1542_s17 + $0x7c8] sm:$0xff] %v901_v49 }
 0x126   : > { %1158 = vst [vmem:[%s1542_s17 + $0x7d0] sm:$0xff] %v902_v52 }
 0x127   : > { %1159 = vst [vmem:[%s1542_s17 + $0x7d8] sm:$0xff] %v903_v55 }
 0x128   : > { %1160 = vst [vmem:[%s1542_s17 + $0x7e0] sm:$0xff] %v904_v58 }
 0x129   : > { %1161 = vst [vmem:[%s1542_s17 + $0x7e8] sm:$0xff] %v905_v61 }
 0x12a   : > { %1162 = vst [vmem:[%s1542_s17 + $0x7f0] sm:$0xff] %v906_v62 }
 0x12b   : > { %1163 = vst [vmem:[%s1542_s17 + $0x7f8] sm:$0xff] %v907_v63 }
 0x12c   : > { %1381 = shalt.err (!%p1378_p4)
}
 0x12d   : > { %s1424_s20 = smov 2048   ;;  %s1425_s21 = smov 128  }
 0x12e   : > { %1276 = dma.vmem_to_hbm [thread:$0]  (%p1486_p11), %s1179_s29, 32768, %s1181_s30, %s1165_s2, %s1424_s20, %s1424_s20, %s1425_s21  }
 0x12f PF: > { %s1195_s22 = sand.u32 1, %s1408_s6   ;;  %p2344_p7 = scmp.ge.s32.totalorder %s1420_s9, 2 }
 0x130   : > { %s1196_s23 = scalar_lea.sflag [#allocation4], %s1195_s22 }
 0x131   : > { %p1283_p5 = pnand %p2344_p7, %p1490_p12 }
 0x133   : > { %p1284_p8 = pneg %p1283_p5 }
 0x135   : > { %1403 = dma.done.wait (%p1284_p8), %s1196_s23, 32768  }
 0x136   : > { %1405 = vsyncadd (%p1284_p8), %s1196_s23, 4294934528  ;;  %p14_p10 = scmp.ge.s32.totalorder %s1461_s12, 4   ;;  %s2345_s6 = smov %s1412_s7 }
 0x137   : > { %s2346_s7 = smov %s1416_s8  ;;  %s2347_s8 = smov %s1473_s15 }
 0x138   : > { %s2348_s9 = smov %s1461_s12  ;;  %16 = sbr.rel (!%p14_p10) target bundleno = 5 (0x5), region = 69 }
 0x13d   :  { %1202 = vsyncpa [#allocation3], 1 }
 0x13e   :  { %1204 = vsyncpa [#allocation3 + $0x1], 1 }
 0x13f   :  { %1205 = vsyncpa [#allocation4], 1 }
 0x140   :  { %1207 = vsyncpa [#allocation4 + $0x1], 1 }

</bundles_post_ra>
